<compile_context>
chip_gen: v7x
topology: tpu7x:2x2x1
jax: 0.10.0
libtpu: 0.0.40
codegen_flags: <defaults>
</compile_context>

<pallas_src>
import functools

import jax
import jax.numpy as jnp
from jax import lax
from jax.experimental import pallas as pl
from jax.experimental.pallas import tpu as pltpu


# ----------------------------- shared math helpers -----------------------------

_GELU_C = 0.7978845608028654  # sqrt(2/pi)


def _gelu_tanh(x):
    return 0.5 * x * (1.0 + jnp.tanh(_GELU_C * (x + 0.044715 * x * x * x)))


def _layernorm(x, gamma, beta, eps=1e-5):
    # Matches torch.nn.LayerNorm (biased variance, eps=1e-5).
    mean = jnp.mean(x, axis=-1, keepdims=True)
    cent = x - mean
    var = jnp.mean(cent * cent, axis=-1, keepdims=True)
    return cent * lax.rsqrt(var + eps) * gamma + beta


# --------------------------------- fused layer kernel ---------------------------

def _layer_kernel(x_ref, g1_ref, be1_ref, wqkv_ref, wo_ref, bo_ref,
                  g2_ref, be2_ref, w1_ref, b1_ref, w2_ref, b2_ref,
                  o_ref, qkv_s, attn_s, *, heads, dim_head, scale):
    """One full transformer layer for one batch element (grid step).

    Shapes:
      x_ref/o_ref  : (1, N, D) f32        g1/be1/g2/be2/bo/b2 : (1, D) f32
      wqkv_ref     : (D, 3*inner) bf16    wo_ref : (inner, D) bf16
      w1_ref       : (D, Hd) bf16         b1_ref : (1, Hd) f32
      w2_ref       : (Hd, D) bf16
      qkv_s        : (N, 3*inner) f32 VMEM scratch
      attn_s       : (N, inner)   f32 VMEM scratch
    """
    inner = heads * dim_head
    x = x_ref[0]                                                    # (N, D) f32

    # ---------------- PreNorm + multi-head attention + out-proj + residual -----
    y = _layernorm(x, g1_ref[...], be1_ref[...]).astype(jnp.bfloat16)
    # Single merged QKV projection: (N, D) @ (D, 3*inner), bf16 x bf16, f32 acc.
    qkv_s[...] = jnp.dot(y, wqkv_ref[...], preferred_element_type=jnp.float32)

    # Small static unroll over heads; per-head tensors are read from / written to
    # VMEM scratch so live ranges stay bounded.  (For large H make heads a grid
    # axis instead.)
    for h in range(heads):
        lo = h * dim_head
        hi = lo + dim_head
        qh = qkv_s[:, lo:hi]                                        # (N, dh) f32
        kh = qkv_s[:, inner + lo:inner + hi]                        # (N, dh) f32
        vh = qkv_s[:, 2 * inner + lo:2 * inner + hi]                # (N, dh) f32

        # scores = q @ k^T (contract on dh, no explicit transpose)
        s = lax.dot_general(qh, kh, (((1,), (1,)), ((), ())),
                            preferred_element_type=jnp.float32) * scale   # (N, N)
        s = s - jnp.max(s, axis=-1, keepdims=True)
        p = jnp.exp(s)
        p = p * pl.reciprocal(jnp.sum(p, axis=-1, keepdims=True), approx=True)

        # Per-head attention output, lane-concatenated into the scratch buffer.
        attn_s[:, lo:hi] = jnp.dot(p, vh, preferred_element_type=jnp.float32)

    # Single merged output projection: (N, inner) @ (inner, D).
    out = jnp.dot(attn_s[...].astype(jnp.bfloat16), wo_ref[...],
                  preferred_element_type=jnp.float32)
    x1 = out + bo_ref[...] + x                                      # residual (f32)

    # ---------------- PreNorm + FeedForward + residual --------------------------
    y2 = _layernorm(x1, g2_ref[...], be2_ref[...]).astype(jnp.bfloat16)
    h1 = jnp.dot(y2, w1_ref[...], preferred_element_type=jnp.float32) + b1_ref[...]
    h1 = _gelu_tanh(h1).astype(jnp.bfloat16)
    out2 = jnp.dot(h1, w2_ref[...], preferred_element_type=jnp.float32) + b2_ref[...]

    o_ref[0] = (out2 + x1).astype(o_ref.dtype)                      # residual


# --------------------------------- wrapper --------------------------------------

def transformer_layer(x, p, *, heads, dim_head):
    """x: (B, N, D) f32.  p: pre-laid-out (see prepare_params) layer params."""
    B, N, D = x.shape
    inner = heads * dim_head
    Hd = p["w1"].shape[1]
    scale = float(dim_head) ** -0.5

    kernel = functools.partial(_layer_kernel, heads=heads, dim_head=dim_head,
                               scale=scale)

    # VMEM budget from the actual block sizes (double-buffered in/out blocks +
    # scratch + slack); explicit so v5e's small default scoped limit and v7x's
    # 64 MiB physical VMEM are respected without relying on defaults.
    def _nbytes(a):
        return int(a.size) * jnp.dtype(a.dtype).itemsize

    weight_keys = ("ln1_g", "ln1_b", "wqkv", "wo", "bo",
                   "ln2_g", "ln2_b", "w1", "b1", "w2", "b2")
    in_block_bytes = N * D * 4 + sum(_nbytes(p[k]) for k in weight_keys)
    out_block_bytes = N * D * 4
    scratch_bytes = (N * 3 * inner + N * inner) * 4
    vmem_limit = int(min(2 * (in_block_bytes + out_block_bytes) + scratch_bytes
                         + (8 << 20), 112 << 20))

    flops = int(B * (2 * N * D * 3 * inner            # merged QKV projection
                     + heads * 2 * (2 * N * N * dim_head)  # scores + attn@V
                     + 2 * N * inner * D              # merged output projection
                     + 2 * 2 * N * D * Hd))           # FFN
    transc = int(B * (heads * N * N + N * Hd))
    bytes_acc = int(2 * B * N * D * 4
                    + sum(_nbytes(p[k]) for k in weight_keys))

    return pl.pallas_call(
        kernel,
        out_shape=jax.ShapeDtypeStruct((B, N, D), jnp.float32),
        grid=(B,),
        in_specs=[
            pl.BlockSpec((1, N, D), lambda b: (b, 0, 0)),        # x
            pl.BlockSpec((1, D), lambda b: (0, 0)),              # ln1 gamma
            pl.BlockSpec((1, D), lambda b: (0, 0)),              # ln1 beta
            pl.BlockSpec((D, 3 * inner), lambda b: (0, 0)),      # wqkv (bf16)
            pl.BlockSpec((inner, D), lambda b: (0, 0)),          # wo   (bf16)
            pl.BlockSpec((1, D), lambda b: (0, 0)),              # b_out
            pl.BlockSpec((1, D), lambda b: (0, 0)),              # ln2 gamma
            pl.BlockSpec((1, D), lambda b: (0, 0)),              # ln2 beta
            pl.BlockSpec((D, Hd), lambda b: (0, 0)),             # w1 (bf16)
            pl.BlockSpec((1, Hd), lambda b: (0, 0)),             # b1
            pl.BlockSpec((Hd, D), lambda b: (0, 0)),             # w2 (bf16)
            pl.BlockSpec((1, D), lambda b: (0, 0)),              # b2
        ],
        out_specs=pl.BlockSpec((1, N, D), lambda b: (b, 0, 0)),
        scratch_shapes=[pltpu.VMEM((N, 3 * inner), jnp.float32),
                        pltpu.VMEM((N, inner), jnp.float32)],
        compiler_params=pltpu.CompilerParams(
            dimension_semantics=("parallel",),
            vmem_limit_bytes=vmem_limit),
        cost_estimate=pl.CostEstimate(flops=flops, transcendentals=transc,
                                      bytes_accessed=bytes_acc),
    )(x, p["ln1_g"], p["ln1_b"], p["wqkv"], p["wo"], p["bo"],
      p["ln2_g"], p["ln2_b"], p["w1"], p["b1"], p["w2"], p["b2"])


def transformer_forward(x, prepped_params, *, heads, dim_head):
    """Forward of the PyTorch Transformer module (dropout=0 / eval mode)."""
    x = x.astype(jnp.float32)
    for p in prepped_params:
        x = transformer_layer(x, p, heads=heads, dim_head=dim_head)
    return x


# --------------------------- one-time parameter prep -----------------------------

def prepare_params(params, *, compute_dtype=jnp.bfloat16):
    """Torch-layout params -> kernel layout (transposed, bf16 weights), ONCE."""
    prepped = []
    for p in params:
        D = p["ln1_g"].shape[0]
        Hd = p["w1"].shape[0]
        prepped.append(dict(
            ln1_g=p["ln1_g"].reshape(1, D).astype(jnp.float32),
            ln1_b=p["ln1_b"].reshape(1, D).astype(jnp.float32),
            # (3*inner, D).T -> (D, 3*inner); columns ordered [q | k | v],
            # head-major within each block -- matches the in-kernel slicing.
            wqkv=p["w_qkv"].T.astype(compute_dtype),
            wo=p["w_out"].T.astype(compute_dtype),                 # (inner, D)
            bo=p["b_out"].reshape(1, D).astype(jnp.float32),
            ln2_g=p["ln2_g"].reshape(1, D).astype(jnp.float32),
            ln2_b=p["ln2_b"].reshape(1, D).astype(jnp.float32),
            w1=p["w1"].T.astype(compute_dtype),                    # (D, Hd)
            b1=p["b1"].reshape(1, Hd).astype(jnp.float32),
            w2=p["w2"].T.astype(compute_dtype),                    # (Hd, D)
            b2=p["b2"].reshape(1, D).astype(jnp.float32),
        ))
    return prepped


# --------------------------- pure-JAX f32 reference ------------------------------

def transformer_ref(x, params, *, heads, dim_head):
    scale = float(dim_head) ** -0.5
    B, N, D = x.shape
    x = x.astype(jnp.float32)
    for p in params:
        y = _layernorm(x, p["ln1_g"], p["ln1_b"])
        qkv = y @ p["w_qkv"].T
        q, k, v = jnp.split(qkv, 3, axis=-1)

        def heads_first(t):
            return t.reshape(B, N, heads, dim_head).transpose(0, 2, 1, 3)

        q, k, v = heads_first(q), heads_first(k), heads_first(v)
        s = jnp.einsum("bhnd,bhmd->bhnm", q, k) * scale
        a = jax.nn.softmax(s, axis=-1)
        o = jnp.einsum("bhnm,bhmd->bhnd", a, v)
        o = o.transpose(0, 2, 1, 3).reshape(B, N, heads * dim_head)
        x = o @ p["w_out"].T + p["b_out"] + x

        y = _layernorm(x, p["ln2_g"], p["ln2_b"])
        h = _gelu_tanh(y @ p["w1"].T + p["b1"])
        x = h @ p["w2"].T + p["b2"] + x
    return x


# --------------------------------- params ----------------------------------------

def init_params(key, depth, dim, heads, dim_head, mlp_dim):
    inner = heads * dim_head
    project_out = not (heads == 1 and dim_head == dim)
    layers = []
    for _ in range(depth):
        key, *ks = jax.random.split(key, 12)
        if project_out:
            w_out = jax.random.normal(ks[3], (dim, inner), jnp.float32) / jnp.sqrt(inner)
            b_out = 0.02 * jax.random.normal(ks[4], (dim,), jnp.float32)
        else:
            # nn.Identity() case emulated with an identity projection.
            w_out = jnp.eye(dim, dtype=jnp.float32)
            b_out = jnp.zeros((dim,), jnp.float32)
        layers.append(dict(
            ln1_g=1.0 + 0.1 * jax.random.normal(ks[0], (dim,), jnp.float32),
            ln1_b=0.1 * jax.random.normal(ks[1], (dim,), jnp.float32),
            w_qkv=jax.random.normal(ks[2], (3 * inner, dim), jnp.float32) / jnp.sqrt(dim),
            w_out=w_out,
            b_out=b_out,
            ln2_g=1.0 + 0.1 * jax.random.normal(ks[5], (dim,), jnp.float32),
            ln2_b=0.1 * jax.random.normal(ks[6], (dim,), jnp.float32),
            w1=jax.random.normal(ks[7], (mlp_dim, dim), jnp.float32) / jnp.sqrt(dim),
            b1=0.02 * jax.random.normal(ks[8], (mlp_dim,), jnp.float32),
            w2=jax.random.normal(ks[9], (dim, mlp_dim), jnp.float32) / jnp.sqrt(mlp_dim),
            b2=0.02 * jax.random.normal(ks[10], (dim,), jnp.float32),
        ))
    return layers


# ----------------------------------- main -----------------------------------------

if __name__ == "__main__":
    B, N = 2, 8
    dim, heads, dim_head, mlp_dim, depth = 32, 4, 16, 64, 2

    key = jax.random.PRNGKey(0)
    key, xk = jax.random.split(key)
    x = jax.random.normal(xk, (B, N, dim), dtype=jnp.float32)
    params = init_params(key, depth, dim, heads, dim_head, mlp_dim)

    # One-time weight re-layout + bf16 cast (outside the per-step forward).
    prepped = jax.tree_util.tree_map(lambda a: a, prepare_params(params))

    fwd = jax.jit(functools.partial(transformer_forward, heads=heads,
                                    dim_head=dim_head))
    out = jax.block_until_ready(fwd(x, prepped))

    ref = transformer_ref(x, params, heads=heads, dim_head=dim_head)
    assert out.shape == (B, N, dim), out.shape
    max_err = float(jnp.max(jnp.abs(out - ref)))
    # Tolerance sized for bf16 matmul inputs with f32 accumulation vs. f32 ref.
    assert jnp.allclose(out, ref, atol=5e-2, rtol=5e-2), max_err

    print("KERNEL_OK")
</pallas_src>

<mosaic_0001>
module attributes {stable_mosaic.version = 11 : i64} {
  func.func @_layer_kernel(%arg0: i32, %arg1: memref<1x8x32xf32, #tpu.memory_space<vmem>>, %arg2: memref<1x32xf32, #tpu.memory_space<vmem>>, %arg3: memref<1x32xf32, #tpu.memory_space<vmem>>, %arg4: memref<32x192xbf16, #tpu.memory_space<vmem>>, %arg5: memref<64x32xbf16, #tpu.memory_space<vmem>>, %arg6: memref<1x32xf32, #tpu.memory_space<vmem>>, %arg7: memref<1x32xf32, #tpu.memory_space<vmem>>, %arg8: memref<1x32xf32, #tpu.memory_space<vmem>>, %arg9: memref<32x64xbf16, #tpu.memory_space<vmem>>, %arg10: memref<1x64xf32, #tpu.memory_space<vmem>>, %arg11: memref<64x32xbf16, #tpu.memory_space<vmem>>, %arg12: memref<1x32xf32, #tpu.memory_space<vmem>>, %arg13: memref<1x8x32xf32, #tpu.memory_space<vmem>>, %arg14: memref<8x192xf32, #tpu.memory_space<vmem>>, %arg15: memref<8x64xf32, #tpu.memory_space<vmem>>) attributes {dimension_semantics = [#tpu.dimension_semantics<parallel>], iteration_bounds = array<i64: 2>, scalar_prefetch = 0 : i64, scratch_operands = 2 : i64, tpu.core_type = #tpu.core_type<tc>, window_params = [{transform_indices = @transform_0, window_bounds = array<i64: 1, 8, 32>}, {pipeline_mode = #tpu.pipeline_mode<synchronous>, transform_indices = @transform_1, window_bounds = array<i64: 1, 32>}, {pipeline_mode = #tpu.pipeline_mode<synchronous>, transform_indices = @transform_2, window_bounds = array<i64: 1, 32>}, {pipeline_mode = #tpu.pipeline_mode<synchronous>, transform_indices = @transform_3, window_bounds = array<i64: 32, 192>}, {pipeline_mode = #tpu.pipeline_mode<synchronous>, transform_indices = @transform_4, window_bounds = array<i64: 64, 32>}, {pipeline_mode = #tpu.pipeline_mode<synchronous>, transform_indices = @transform_5, window_bounds = array<i64: 1, 32>}, {pipeline_mode = #tpu.pipeline_mode<synchronous>, transform_indices = @transform_6, window_bounds = array<i64: 1, 32>}, {pipeline_mode = #tpu.pipeline_mode<synchronous>, transform_indices = @transform_7, window_bounds = array<i64: 1, 32>}, {pipeline_mode = #tpu.pipeline_mode<synchronous>, transform_indices = @transform_8, window_bounds = array<i64: 32, 64>}, {pipeline_mode = #tpu.pipeline_mode<synchronous>, transform_indices = @transform_9, window_bounds = array<i64: 1, 64>}, {pipeline_mode = #tpu.pipeline_mode<synchronous>, transform_indices = @transform_10, window_bounds = array<i64: 64, 32>}, {pipeline_mode = #tpu.pipeline_mode<synchronous>, transform_indices = @transform_11, window_bounds = array<i64: 1, 32>}, {transform_indices = @transform_12, window_bounds = array<i64: 1, 8, 32>}]} {
    %c0 = arith.constant 0 : index
    %c0_0 = arith.constant 0 : index
    %c0_1 = arith.constant 0 : index
    %0 = vector.load %arg1[%c0, %c0_0, %c0_1] : memref<1x8x32xf32, #tpu.memory_space<vmem>>, vector<1x8x32xf32>
    %1 = vector.shape_cast %0 : vector<1x8x32xf32> to vector<8x32xf32>
    %c0_2 = arith.constant 0 : index
    %c0_3 = arith.constant 0 : index
    %2 = vector.load %arg2[%c0_2, %c0_3] : memref<1x32xf32, #tpu.memory_space<vmem>>, vector<1x32xf32>
    %c0_4 = arith.constant 0 : index
    %c0_5 = arith.constant 0 : index
    %3 = vector.load %arg3[%c0_4, %c0_5] : memref<1x32xf32, #tpu.memory_space<vmem>>, vector<1x32xf32>
    %cst = arith.constant dense<0.000000e+00> : vector<8xf32>
    %4 = vector.multi_reduction <add>, %1, %cst [1] : vector<8x32xf32> to vector<8xf32>
    %5 = vector.shape_cast %4 : vector<8xf32> to vector<8x1xf32>
    %cst_6 = arith.constant 3.200000e+01 : f32
    %6 = vector.broadcast %cst_6 : f32 to vector<8x1xf32>
    %7 = arith.divf %5, %6 : vector<8x1xf32>
    %8 = vector.broadcast %7 : vector<8x1xf32> to vector<8x32xf32>
    %9 = arith.subf %1, %8 : vector<8x32xf32>
    %10 = arith.mulf %9, %9 : vector<8x32xf32>
    %cst_7 = arith.constant dense<0.000000e+00> : vector<8xf32>
    %11 = vector.multi_reduction <add>, %10, %cst_7 [1] : vector<8x32xf32> to vector<8xf32>
    %12 = vector.shape_cast %11 : vector<8xf32> to vector<8x1xf32>
    %cst_8 = arith.constant 3.200000e+01 : f32
    %13 = vector.broadcast %cst_8 : f32 to vector<8x1xf32>
    %14 = arith.divf %12, %13 : vector<8x1xf32>
    %cst_9 = arith.constant 9.99999974E-6 : f32
    %15 = vector.broadcast %cst_9 : f32 to vector<8x1xf32>
    %16 = arith.addf %14, %15 : vector<8x1xf32>
    %17 = math.rsqrt %16 : vector<8x1xf32>
    %18 = vector.broadcast %17 : vector<8x1xf32> to vector<8x32xf32>
    %19 = arith.mulf %9, %18 : vector<8x32xf32>
    %20 = vector.broadcast %2 : vector<1x32xf32> to vector<8x32xf32>
    %21 = arith.mulf %19, %20 : vector<8x32xf32>
    %22 = vector.broadcast %3 : vector<1x32xf32> to vector<8x32xf32>
    %23 = arith.addf %21, %22 : vector<8x32xf32>
    %24 = arith.truncf %23 : vector<8x32xf32> to vector<8x32xbf16>
    %c0_10 = arith.constant 0 : index
    %c0_11 = arith.constant 0 : index
    %25 = vector.load %arg4[%c0_10, %c0_11] : memref<32x192xbf16, #tpu.memory_space<vmem>>, vector<32x192xbf16>
    %cst_12 = arith.constant dense<0.000000e+00> : vector<8x192xf32>
    %26 = tpu.matmul %24, %25, %cst_12 {dimension_numbers = #tpu.dot_dimension_numbers<[1], [0], [0], [1], [0, 0, 1, 1], [], []>} : vector<8x32xbf16>, vector<32x192xbf16>, vector<8x192xf32> -> vector<8x192xf32>
    %c0_13 = arith.constant 0 : index
    %c0_14 = arith.constant 0 : index
    %27 = vector.load %arg14[%c0_13, %c0_14] : memref<8x192xf32, #tpu.memory_space<vmem>>, vector<8x192xf32>
    tpu.vector_store %arg14[%c0_13, %c0_14], %26 {strides = array<i32>} : memref<8x192xf32, #tpu.memory_space<vmem>>, vector<8x192xf32>,
    %c0_15 = arith.constant 0 : index
    %c0_16 = arith.constant 0 : index
    %28 = vector.load %arg14[%c0_15, %c0_16] : memref<8x192xf32, #tpu.memory_space<vmem>>, vector<8x16xf32>
    %c0_17 = arith.constant 0 : index
    %c64 = arith.constant 64 : index
    %29 = vector.load %arg14[%c0_17, %c64] : memref<8x192xf32, #tpu.memory_space<vmem>>, vector<8x16xf32>
    %c0_18 = arith.constant 0 : index
    %c128 = arith.constant 128 : index
    %30 = vector.load %arg14[%c0_18, %c128] : memref<8x192xf32, #tpu.memory_space<vmem>>, vector<8x16xf32>
    %cst_19 = arith.constant dense<0.000000e+00> : vector<8x8xf32>
    %31 = tpu.matmul %28, %29, %cst_19 {dimension_numbers = #tpu.dot_dimension_numbers<[1], [1], [0], [0], [0, 0, 1, 0], [], []>} : vector<8x16xf32>, vector<8x16xf32>, vector<8x8xf32> -> vector<8x8xf32>
    %cst_20 = arith.constant 2.500000e-01 : f32
    %32 = vector.broadcast %cst_20 : f32 to vector<8x8xf32>
    %33 = arith.mulf %31, %32 : vector<8x8xf32>
    %cst_21 = arith.constant dense<0xFF800000> : vector<8xf32>
    %34 = vector.multi_reduction <maximumf>, %33, %cst_21 [1] : vector<8x8xf32> to vector<8xf32>
    %35 = vector.shape_cast %34 : vector<8xf32> to vector<8x1xf32>
    %36 = vector.broadcast %35 : vector<8x1xf32> to vector<8x8xf32>
    %37 = arith.subf %33, %36 : vector<8x8xf32>
    %38 = math.exp %37 : vector<8x8xf32>
    %cst_22 = arith.constant dense<0.000000e+00> : vector<8xf32>
    %39 = vector.multi_reduction <add>, %38, %cst_22 [1] : vector<8x8xf32> to vector<8xf32>
    %40 = vector.shape_cast %39 : vector<8xf32> to vector<8x1xf32>
    %41 = tpu.reciprocal %40 {approx = true} : vector<8x1xf32> -> vector<8x1xf32>
    %42 = vector.broadcast %41 : vector<8x1xf32> to vector<8x8xf32>
    %43 = arith.mulf %38, %42 : vector<8x8xf32>
    %cst_23 = arith.constant dense<0.000000e+00> : vector<8x16xf32>
    %44 = tpu.matmul %43, %30, %cst_23 {dimension_numbers = #tpu.dot_dimension_numbers<[1], [0], [0], [1], [0, 0, 1, 1], [], []>} : vector<8x8xf32>, vector<8x16xf32>, vector<8x16xf32> -> vector<8x16xf32>
    %c0_24 = arith.constant 0 : index
    %c0_25 = arith.constant 0 : index
    %45 = vector.load %arg15[%c0_24, %c0_25] : memref<8x64xf32, #tpu.memory_space<vmem>>, vector<8x16xf32>
    tpu.vector_store %arg15[%c0_24, %c0_25], %44 {strides = array<i32>} : memref<8x64xf32, #tpu.memory_space<vmem>>, vector<8x16xf32>,
    %c0_26 = arith.constant 0 : index
    %c16 = arith.constant 16 : index
    %46 = vector.load %arg14[%c0_26, %c16] : memref<8x192xf32, #tpu.memory_space<vmem>>, vector<8x16xf32>
    %c0_27 = arith.constant 0 : index
    %c80 = arith.constant 80 : index
    %47 = vector.load %arg14[%c0_27, %c80] : memref<8x192xf32, #tpu.memory_space<vmem>>, vector<8x16xf32>
    %c0_28 = arith.constant 0 : index
    %c144 = arith.constant 144 : index
    %48 = vector.load %arg14[%c0_28, %c144] : memref<8x192xf32, #tpu.memory_space<vmem>>, vector<8x16xf32>
    %cst_29 = arith.constant dense<0.000000e+00> : vector<8x8xf32>
    %49 = tpu.matmul %46, %47, %cst_29 {dimension_numbers = #tpu.dot_dimension_numbers<[1], [1], [0], [0], [0, 0, 1, 0], [], []>} : vector<8x16xf32>, vector<8x16xf32>, vector<8x8xf32> -> vector<8x8xf32>
    %cst_30 = arith.constant 2.500000e-01 : f32
    %50 = vector.broadcast %cst_30 : f32 to vector<8x8xf32>
    %51 = arith.mulf %49, %50 : vector<8x8xf32>
    %cst_31 = arith.constant dense<0xFF800000> : vector<8xf32>
    %52 = vector.multi_reduction <maximumf>, %51, %cst_31 [1] : vector<8x8xf32> to vector<8xf32>
    %53 = vector.shape_cast %52 : vector<8xf32> to vector<8x1xf32>
    %54 = vector.broadcast %53 : vector<8x1xf32> to vector<8x8xf32>
    %55 = arith.subf %51, %54 : vector<8x8xf32>
    %56 = math.exp %55 : vector<8x8xf32>
    %cst_32 = arith.constant dense<0.000000e+00> : vector<8xf32>
    %57 = vector.multi_reduction <add>, %56, %cst_32 [1] : vector<8x8xf32> to vector<8xf32>
    %58 = vector.shape_cast %57 : vector<8xf32> to vector<8x1xf32>
    %59 = tpu.reciprocal %58 {approx = true} : vector<8x1xf32> -> vector<8x1xf32>
    %60 = vector.broadcast %59 : vector<8x1xf32> to vector<8x8xf32>
    %61 = arith.mulf %56, %60 : vector<8x8xf32>
    %cst_33 = arith.constant dense<0.000000e+00> : vector<8x16xf32>
    %62 = tpu.matmul %61, %48, %cst_33 {dimension_numbers = #tpu.dot_dimension_numbers<[1], [0], [0], [1], [0, 0, 1, 1], [], []>} : vector<8x8xf32>, vector<8x16xf32>, vector<8x16xf32> -> vector<8x16xf32>
    %c0_34 = arith.constant 0 : index
    %c16_35 = arith.constant 16 : index
    %63 = vector.load %arg15[%c0_34, %c16_35] : memref<8x64xf32, #tpu.memory_space<vmem>>, vector<8x16xf32>
    tpu.vector_store %arg15[%c0_34, %c16_35], %62 {strides = array<i32>} : memref<8x64xf32, #tpu.memory_space<vmem>>, vector<8x16xf32>,
    %c0_36 = arith.constant 0 : index
    %c32 = arith.constant 32 : index
    %64 = vector.load %arg14[%c0_36, %c32] : memref<8x192xf32, #tpu.memory_space<vmem>>, vector<8x16xf32>
    %c0_37 = arith.constant 0 : index
    %c96 = arith.constant 96 : index
    %65 = vector.load %arg14[%c0_37, %c96] : memref<8x192xf32, #tpu.memory_space<vmem>>, vector<8x16xf32>
    %c0_38 = arith.constant 0 : index
    %c160 = arith.constant 160 : index
    %66 = vector.load %arg14[%c0_38, %c160] : memref<8x192xf32, #tpu.memory_space<vmem>>, vector<8x16xf32>
    %cst_39 = arith.constant dense<0.000000e+00> : vector<8x8xf32>
    %67 = tpu.matmul %64, %65, %cst_39 {dimension_numbers = #tpu.dot_dimension_numbers<[1], [1], [0], [0], [0, 0, 1, 0], [], []>} : vector<8x16xf32>, vector<8x16xf32>, vector<8x8xf32> -> vector<8x8xf32>
    %cst_40 = arith.constant 2.500000e-01 : f32
    %68 = vector.broadcast %cst_40 : f32 to vector<8x8xf32>
    %69 = arith.mulf %67, %68 : vector<8x8xf32>
    %cst_41 = arith.constant dense<0xFF800000> : vector<8xf32>
    %70 = vector.multi_reduction <maximumf>, %69, %cst_41 [1] : vector<8x8xf32> to vector<8xf32>
    %71 = vector.shape_cast %70 : vector<8xf32> to vector<8x1xf32>
    %72 = vector.broadcast %71 : vector<8x1xf32> to vector<8x8xf32>
    %73 = arith.subf %69, %72 : vector<8x8xf32>
    %74 = math.exp %73 : vector<8x8xf32>
    %cst_42 = arith.constant dense<0.000000e+00> : vector<8xf32>
    %75 = vector.multi_reduction <add>, %74, %cst_42 [1] : vector<8x8xf32> to vector<8xf32>
    %76 = vector.shape_cast %75 : vector<8xf32> to vector<8x1xf32>
    %77 = tpu.reciprocal %76 {approx = true} : vector<8x1xf32> -> vector<8x1xf32>
    %78 = vector.broadcast %77 : vector<8x1xf32> to vector<8x8xf32>
    %79 = arith.mulf %74, %78 : vector<8x8xf32>
    %cst_43 = arith.constant dense<0.000000e+00> : vector<8x16xf32>
    %80 = tpu.matmul %79, %66, %cst_43 {dimension_numbers = #tpu.dot_dimension_numbers<[1], [0], [0], [1], [0, 0, 1, 1], [], []>} : vector<8x8xf32>, vector<8x16xf32>, vector<8x16xf32> -> vector<8x16xf32>
    %c0_44 = arith.constant 0 : index
    %c32_45 = arith.constant 32 : index
    %81 = vector.load %arg15[%c0_44, %c32_45] : memref<8x64xf32, #tpu.memory_space<vmem>>, vector<8x16xf32>
    tpu.vector_store %arg15[%c0_44, %c32_45], %80 {strides = array<i32>} : memref<8x64xf32, #tpu.memory_space<vmem>>, vector<8x16xf32>,
    %c0_46 = arith.constant 0 : index
    %c48 = arith.constant 48 : index
    %82 = vector.load %arg14[%c0_46, %c48] : memref<8x192xf32, #tpu.memory_space<vmem>>, vector<8x16xf32>
    %c0_47 = arith.constant 0 : index
    %c112 = arith.constant 112 : index
    %83 = vector.load %arg14[%c0_47, %c112] : memref<8x192xf32, #tpu.memory_space<vmem>>, vector<8x16xf32>
    %c0_48 = arith.constant 0 : index
    %c176 = arith.constant 176 : index
    %84 = vector.load %arg14[%c0_48, %c176] : memref<8x192xf32, #tpu.memory_space<vmem>>, vector<8x16xf32>
    %cst_49 = arith.constant dense<0.000000e+00> : vector<8x8xf32>
    %85 = tpu.matmul %82, %83, %cst_49 {dimension_numbers = #tpu.dot_dimension_numbers<[1], [1], [0], [0], [0, 0, 1, 0], [], []>} : vector<8x16xf32>, vector<8x16xf32>, vector<8x8xf32> -> vector<8x8xf32>
    %cst_50 = arith.constant 2.500000e-01 : f32
    %86 = vector.broadcast %cst_50 : f32 to vector<8x8xf32>
    %87 = arith.mulf %85, %86 : vector<8x8xf32>
    %cst_51 = arith.constant dense<0xFF800000> : vector<8xf32>
    %88 = vector.multi_reduction <maximumf>, %87, %cst_51 [1] : vector<8x8xf32> to vector<8xf32>
    %89 = vector.shape_cast %88 : vector<8xf32> to vector<8x1xf32>
    %90 = vector.broadcast %89 : vector<8x1xf32> to vector<8x8xf32>
    %91 = arith.subf %87, %90 : vector<8x8xf32>
    %92 = math.exp %91 : vector<8x8xf32>
    %cst_52 = arith.constant dense<0.000000e+00> : vector<8xf32>
    %93 = vector.multi_reduction <add>, %92, %cst_52 [1] : vector<8x8xf32> to vector<8xf32>
    %94 = vector.shape_cast %93 : vector<8xf32> to vector<8x1xf32>
    %95 = tpu.reciprocal %94 {approx = true} : vector<8x1xf32> -> vector<8x1xf32>
    %96 = vector.broadcast %95 : vector<8x1xf32> to vector<8x8xf32>
    %97 = arith.mulf %92, %96 : vector<8x8xf32>
    %cst_53 = arith.constant dense<0.000000e+00> : vector<8x16xf32>
    %98 = tpu.matmul %97, %84, %cst_53 {dimension_numbers = #tpu.dot_dimension_numbers<[1], [0], [0], [1], [0, 0, 1, 1], [], []>} : vector<8x8xf32>, vector<8x16xf32>, vector<8x16xf32> -> vector<8x16xf32>
    %c0_54 = arith.constant 0 : index
    %c48_55 = arith.constant 48 : index
    %99 = vector.load %arg15[%c0_54, %c48_55] : memref<8x64xf32, #tpu.memory_space<vmem>>, vector<8x16xf32>
    tpu.vector_store %arg15[%c0_54, %c48_55], %98 {strides = array<i32>} : memref<8x64xf32, #tpu.memory_space<vmem>>, vector<8x16xf32>,
    %c0_56 = arith.constant 0 : index
    %c0_57 = arith.constant 0 : index
    %100 = vector.load %arg15[%c0_56, %c0_57] : memref<8x64xf32, #tpu.memory_space<vmem>>, vector<8x64xf32>
    %101 = arith.truncf %100 : vector<8x64xf32> to vector<8x64xbf16>
    %c0_58 = arith.constant 0 : index
    %c0_59 = arith.constant 0 : index
    %102 = vector.load %arg5[%c0_58, %c0_59] : memref<64x32xbf16, #tpu.memory_space<vmem>>, vector<64x32xbf16>
    %cst_60 = arith.constant dense<0.000000e+00> : vector<8x32xf32>
    %103 = tpu.matmul %101, %102, %cst_60 {dimension_numbers = #tpu.dot_dimension_numbers<[1], [0], [0], [1], [0, 0, 1, 1], [], []>} : vector<8x64xbf16>, vector<64x32xbf16>, vector<8x32xf32> -> vector<8x32xf32>
    %c0_61 = arith.constant 0 : index
    %c0_62 = arith.constant 0 : index
    %104 = vector.load %arg6[%c0_61, %c0_62] : memref<1x32xf32, #tpu.memory_space<vmem>>, vector<1x32xf32>
    %105 = vector.broadcast %104 : vector<1x32xf32> to vector<8x32xf32>
    %106 = arith.addf %103, %105 : vector<8x32xf32>
    %107 = arith.addf %106, %1 : vector<8x32xf32>
    %c0_63 = arith.constant 0 : index
    %c0_64 = arith.constant 0 : index
    %108 = vector.load %arg7[%c0_63, %c0_64] : memref<1x32xf32, #tpu.memory_space<vmem>>, vector<1x32xf32>
    %c0_65 = arith.constant 0 : index
    %c0_66 = arith.constant 0 : index
    %109 = vector.load %arg8[%c0_65, %c0_66] : memref<1x32xf32, #tpu.memory_space<vmem>>, vector<1x32xf32>
    %cst_67 = arith.constant dense<0.000000e+00> : vector<8xf32>
    %110 = vector.multi_reduction <add>, %107, %cst_67 [1] : vector<8x32xf32> to vector<8xf32>
    %111 = vector.shape_cast %110 : vector<8xf32> to vector<8x1xf32>
    %cst_68 = arith.constant 3.200000e+01 : f32
    %112 = vector.broadcast %cst_68 : f32 to vector<8x1xf32>
    %113 = arith.divf %111, %112 : vector<8x1xf32>
    %114 = vector.broadcast %113 : vector<8x1xf32> to vector<8x32xf32>
    %115 = arith.subf %107, %114 : vector<8x32xf32>
    %116 = arith.mulf %115, %115 : vector<8x32xf32>
    %cst_69 = arith.constant dense<0.000000e+00> : vector<8xf32>
    %117 = vector.multi_reduction <add>, %116, %cst_69 [1] : vector<8x32xf32> to vector<8xf32>
    %118 = vector.shape_cast %117 : vector<8xf32> to vector<8x1xf32>
    %cst_70 = arith.constant 3.200000e+01 : f32
    %119 = vector.broadcast %cst_70 : f32 to vector<8x1xf32>
    %120 = arith.divf %118, %119 : vector<8x1xf32>
    %cst_71 = arith.constant 9.99999974E-6 : f32
    %121 = vector.broadcast %cst_71 : f32 to vector<8x1xf32>
    %122 = arith.addf %120, %121 : vector<8x1xf32>
    %123 = math.rsqrt %122 : vector<8x1xf32>
    %124 = vector.broadcast %123 : vector<8x1xf32> to vector<8x32xf32>
    %125 = arith.mulf %115, %124 : vector<8x32xf32>
    %126 = vector.broadcast %108 : vector<1x32xf32> to vector<8x32xf32>
    %127 = arith.mulf %125, %126 : vector<8x32xf32>
    %128 = vector.broadcast %109 : vector<1x32xf32> to vector<8x32xf32>
    %129 = arith.addf %127, %128 : vector<8x32xf32>
    %130 = arith.truncf %129 : vector<8x32xf32> to vector<8x32xbf16>
    %c0_72 = arith.constant 0 : index
    %c0_73 = arith.constant 0 : index
    %131 = vector.load %arg9[%c0_72, %c0_73] : memref<32x64xbf16, #tpu.memory_space<vmem>>, vector<32x64xbf16>
    %cst_74 = arith.constant dense<0.000000e+00> : vector<8x64xf32>
    %132 = tpu.matmul %130, %131, %cst_74 {dimension_numbers = #tpu.dot_dimension_numbers<[1], [0], [0], [1], [0, 0, 1, 1], [], []>} : vector<8x32xbf16>, vector<32x64xbf16>, vector<8x64xf32> -> vector<8x64xf32>
    %c0_75 = arith.constant 0 : index
    %c0_76 = arith.constant 0 : index
    %133 = vector.load %arg10[%c0_75, %c0_76] : memref<1x64xf32, #tpu.memory_space<vmem>>, vector<1x64xf32>
    %134 = vector.broadcast %133 : vector<1x64xf32> to vector<8x64xf32>
    %135 = arith.addf %132, %134 : vector<8x64xf32>
    %cst_77 = arith.constant 5.000000e-01 : f32
    %136 = vector.broadcast %cst_77 : f32 to vector<8x64xf32>
    %137 = arith.mulf %136, %135 : vector<8x64xf32>
    %cst_78 = arith.constant 4.471500e-02 : f32
    %138 = vector.broadcast %cst_78 : f32 to vector<8x64xf32>
    %139 = arith.mulf %138, %135 : vector<8x64xf32>
    %140 = arith.mulf %139, %135 : vector<8x64xf32>
    %141 = arith.mulf %140, %135 : vector<8x64xf32>
    %142 = arith.addf %135, %141 : vector<8x64xf32>
    %cst_79 = arith.constant 0.797884583 : f32
    %143 = vector.broadcast %cst_79 : f32 to vector<8x64xf32>
    %144 = arith.mulf %143, %142 : vector<8x64xf32>
    %145 = math.tanh %144 : vector<8x64xf32>
    %cst_80 = arith.constant 1.000000e+00 : f32
    %146 = vector.broadcast %cst_80 : f32 to vector<8x64xf32>
    %147 = arith.addf %146, %145 : vector<8x64xf32>
    %148 = arith.mulf %137, %147 : vector<8x64xf32>
    %149 = arith.truncf %148 : vector<8x64xf32> to vector<8x64xbf16>
    %c0_81 = arith.constant 0 : index
    %c0_82 = arith.constant 0 : index
    %150 = vector.load %arg11[%c0_81, %c0_82] : memref<64x32xbf16, #tpu.memory_space<vmem>>, vector<64x32xbf16>
    %cst_83 = arith.constant dense<0.000000e+00> : vector<8x32xf32>
    %151 = tpu.matmul %149, %150, %cst_83 {dimension_numbers = #tpu.dot_dimension_numbers<[1], [0], [0], [1], [0, 0, 1, 1], [], []>} : vector<8x64xbf16>, vector<64x32xbf16>, vector<8x32xf32> -> vector<8x32xf32>
    %c0_84 = arith.constant 0 : index
    %c0_85 = arith.constant 0 : index
    %152 = vector.load %arg12[%c0_84, %c0_85] : memref<1x32xf32, #tpu.memory_space<vmem>>, vector<1x32xf32>
    %153 = vector.broadcast %152 : vector<1x32xf32> to vector<8x32xf32>
    %154 = arith.addf %151, %153 : vector<8x32xf32>
    %155 = arith.addf %154, %107 : vector<8x32xf32>
    %c0_86 = arith.constant 0 : index
    %c0_87 = arith.constant 0 : index
    %c0_88 = arith.constant 0 : index
    %156 = vector.load %arg13[%c0_86, %c0_87, %c0_88] : memref<1x8x32xf32, #tpu.memory_space<vmem>>, vector<1x8x32xf32>
    %157 = vector.shape_cast %156 : vector<1x8x32xf32> to vector<8x32xf32>
    %158 = vector.shape_cast %155 : vector<8x32xf32> to vector<1x8x32xf32>
    tpu.vector_store %arg13[%c0_86, %c0_87, %c0_88], %158 {strides = array<i32>} : memref<1x8x32xf32, #tpu.memory_space<vmem>>, vector<1x8x32xf32>,
    return
  }
  func.func @transform_0(%arg0: i32) -> (i32, i32, i32) {
    %c0_i32 = arith.constant 0 : i32
    %c0_i32_0 = arith.constant 0 : i32
    %c0_i32_1 = arith.constant 0 : i32
    return %arg0, %c0_i32, %c0_i32_0 : i32, i32, i32
  }
  func.func @transform_1(%arg0: i32) -> (i32, i32) {
    %c0_i32 = arith.constant 0 : i32
    %c0_i32_0 = arith.constant 0 : i32
    %c0_i32_1 = arith.constant 0 : i32
    return %c0_i32, %c0_i32_0 : i32, i32
  }
  func.func @transform_2(%arg0: i32) -> (i32, i32) {
    %c0_i32 = arith.constant 0 : i32
    %c0_i32_0 = arith.constant 0 : i32
    %c0_i32_1 = arith.constant 0 : i32
    return %c0_i32, %c0_i32_0 : i32, i32
  }
  func.func @transform_3(%arg0: i32) -> (i32, i32) {
    %c0_i32 = arith.constant 0 : i32
    %c0_i32_0 = arith.constant 0 : i32
    %c0_i32_1 = arith.constant 0 : i32
    return %c0_i32, %c0_i32_0 : i32, i32
  }
  func.func @transform_4(%arg0: i32) -> (i32, i32) {
    %c0_i32 = arith.constant 0 : i32
    %c0_i32_0 = arith.constant 0 : i32
    %c0_i32_1 = arith.constant 0 : i32
    return %c0_i32, %c0_i32_0 : i32, i32
  }
  func.func @transform_5(%arg0: i32) -> (i32, i32) {
    %c0_i32 = arith.constant 0 : i32
    %c0_i32_0 = arith.constant 0 : i32
    %c0_i32_1 = arith.constant 0 : i32
    return %c0_i32, %c0_i32_0 : i32, i32
  }
  func.func @transform_6(%arg0: i32) -> (i32, i32) {
    %c0_i32 = arith.constant 0 : i32
    %c0_i32_0 = arith.constant 0 : i32
    %c0_i32_1 = arith.constant 0 : i32
    return %c0_i32, %c0_i32_0 : i32, i32
  }
  func.func @transform_7(%arg0: i32) -> (i32, i32) {
    %c0_i32 = arith.constant 0 : i32
    %c0_i32_0 = arith.constant 0 : i32
    %c0_i32_1 = arith.constant 0 : i32
    return %c0_i32, %c0_i32_0 : i32, i32
  }
  func.func @transform_8(%arg0: i32) -> (i32, i32) {
    %c0_i32 = arith.constant 0 : i32
    %c0_i32_0 = arith.constant 0 : i32
    %c0_i32_1 = arith.constant 0 : i32
    return %c0_i32, %c0_i32_0 : i32, i32
  }
  func.func @transform_9(%arg0: i32) -> (i32, i32) {
    %c0_i32 = arith.constant 0 : i32
    %c0_i32_0 = arith.constant 0 : i32
    %c0_i32_1 = arith.constant 0 : i32
    return %c0_i32, %c0_i32_0 : i32, i32
  }
  func.func @transform_10(%arg0: i32) -> (i32, i32) {
    %c0_i32 = arith.constant 0 : i32
    %c0_i32_0 = arith.constant 0 : i32
    %c0_i32_1 = arith.constant 0 : i32
    return %c0_i32, %c0_i32_0 : i32, i32
  }
  func.func @transform_11(%arg0: i32) -> (i32, i32) {
    %c0_i32 = arith.constant 0 : i32
    %c0_i32_0 = arith.constant 0 : i32
    %c0_i32_1 = arith.constant 0 : i32
    return %c0_i32, %c0_i32_0 : i32, i32
  }
  func.func @transform_12(%arg0: i32) -> (i32, i32, i32) {
    %c0_i32 = arith.constant 0 : i32
    %c0_i32_0 = arith.constant 0 : i32
    %c0_i32_1 = arith.constant 0 : i32
    return %arg0, %c0_i32, %c0_i32_0 : i32, i32, i32
  }
}

module attributes {stable_mosaic.version = 11 : i64} {
  func.func @_layer_kernel(%arg0: i32, %arg1: memref<1x8x32xf32, #tpu.memory_space<vmem>>, %arg2: memref<1x32xf32, #tpu.memory_space<vmem>>, %arg3: memref<1x32xf32, #tpu.memory_space<vmem>>, %arg4: memref<32x192xbf16, #tpu.memory_space<vmem>>, %arg5: memref<64x32xbf16, #tpu.memory_space<vmem>>, %arg6: memref<1x32xf32, #tpu.memory_space<vmem>>, %arg7: memref<1x32xf32, #tpu.memory_space<vmem>>, %arg8: memref<1x32xf32, #tpu.memory_space<vmem>>, %arg9: memref<32x64xbf16, #tpu.memory_space<vmem>>, %arg10: memref<1x64xf32, #tpu.memory_space<vmem>>, %arg11: memref<64x32xbf16, #tpu.memory_space<vmem>>, %arg12: memref<1x32xf32, #tpu.memory_space<vmem>>, %arg13: memref<1x8x32xf32, #tpu.memory_space<vmem>>, %arg14: memref<8x192xf32, #tpu.memory_space<vmem>>, %arg15: memref<8x64xf32, #tpu.memory_space<vmem>>) attributes {dimension_semantics = [#tpu.dimension_semantics<parallel>], iteration_bounds = array<i64: 2>, scalar_prefetch = 0 : i64, scratch_operands = 2 : i64, tpu.core_type = #tpu.core_type<tc>, window_params = [{transform_indices = @transform_0, window_bounds = array<i64: 1, 8, 32>}, {pipeline_mode = #tpu.pipeline_mode<synchronous>, transform_indices = @transform_1, window_bounds = array<i64: 1, 32>}, {pipeline_mode = #tpu.pipeline_mode<synchronous>, transform_indices = @transform_2, window_bounds = array<i64: 1, 32>}, {pipeline_mode = #tpu.pipeline_mode<synchronous>, transform_indices = @transform_3, window_bounds = array<i64: 32, 192>}, {pipeline_mode = #tpu.pipeline_mode<synchronous>, transform_indices = @transform_4, window_bounds = array<i64: 64, 32>}, {pipeline_mode = #tpu.pipeline_mode<synchronous>, transform_indices = @transform_5, window_bounds = array<i64: 1, 32>}, {pipeline_mode = #tpu.pipeline_mode<synchronous>, transform_indices = @transform_6, window_bounds = array<i64: 1, 32>}, {pipeline_mode = #tpu.pipeline_mode<synchronous>, transform_indices = @transform_7, window_bounds = array<i64: 1, 32>}, {pipeline_mode = #tpu.pipeline_mode<synchronous>, transform_indices = @transform_8, window_bounds = array<i64: 32, 64>}, {pipeline_mode = #tpu.pipeline_mode<synchronous>, transform_indices = @transform_9, window_bounds = array<i64: 1, 64>}, {pipeline_mode = #tpu.pipeline_mode<synchronous>, transform_indices = @transform_10, window_bounds = array<i64: 64, 32>}, {pipeline_mode = #tpu.pipeline_mode<synchronous>, transform_indices = @transform_11, window_bounds = array<i64: 1, 32>}, {transform_indices = @transform_12, window_bounds = array<i64: 1, 8, 32>}]} {
    %c0 = arith.constant 0 : index
    %c0_0 = arith.constant 0 : index
    %c0_1 = arith.constant 0 : index
    %0 = vector.load %arg1[%c0, %c0_0, %c0_1] : memref<1x8x32xf32, #tpu.memory_space<vmem>>, vector<1x8x32xf32>
    %1 = vector.shape_cast %0 : vector<1x8x32xf32> to vector<8x32xf32>
    %c0_2 = arith.constant 0 : index
    %c0_3 = arith.constant 0 : index
    %2 = vector.load %arg2[%c0_2, %c0_3] : memref<1x32xf32, #tpu.memory_space<vmem>>, vector<1x32xf32>
    %c0_4 = arith.constant 0 : index
    %c0_5 = arith.constant 0 : index
    %3 = vector.load %arg3[%c0_4, %c0_5] : memref<1x32xf32, #tpu.memory_space<vmem>>, vector<1x32xf32>
    %cst = arith.constant dense<0.000000e+00> : vector<8xf32>
    %4 = vector.multi_reduction <add>, %1, %cst [1] : vector<8x32xf32> to vector<8xf32>
    %5 = vector.shape_cast %4 : vector<8xf32> to vector<8x1xf32>
    %cst_6 = arith.constant 3.200000e+01 : f32
    %6 = vector.broadcast %cst_6 : f32 to vector<8x1xf32>
    %7 = arith.divf %5, %6 : vector<8x1xf32>
    %8 = vector.broadcast %7 : vector<8x1xf32> to vector<8x32xf32>
    %9 = arith.subf %1, %8 : vector<8x32xf32>
    %10 = arith.mulf %9, %9 : vector<8x32xf32>
    %cst_7 = arith.constant dense<0.000000e+00> : vector<8xf32>
    %11 = vector.multi_reduction <add>, %10, %cst_7 [1] : vector<8x32xf32> to vector<8xf32>
    %12 = vector.shape_cast %11 : vector<8xf32> to vector<8x1xf32>
    %cst_8 = arith.constant 3.200000e+01 : f32
    %13 = vector.broadcast %cst_8 : f32 to vector<8x1xf32>
    %14 = arith.divf %12, %13 : vector<8x1xf32>
    %cst_9 = arith.constant 9.99999974E-6 : f32
    %15 = vector.broadcast %cst_9 : f32 to vector<8x1xf32>
    %16 = arith.addf %14, %15 : vector<8x1xf32>
    %17 = math.rsqrt %16 : vector<8x1xf32>
    %18 = vector.broadcast %17 : vector<8x1xf32> to vector<8x32xf32>
    %19 = arith.mulf %9, %18 : vector<8x32xf32>
    %20 = vector.broadcast %2 : vector<1x32xf32> to vector<8x32xf32>
    %21 = arith.mulf %19, %20 : vector<8x32xf32>
    %22 = vector.broadcast %3 : vector<1x32xf32> to vector<8x32xf32>
    %23 = arith.addf %21, %22 : vector<8x32xf32>
    %24 = arith.truncf %23 : vector<8x32xf32> to vector<8x32xbf16>
    %c0_10 = arith.constant 0 : index
    %c0_11 = arith.constant 0 : index
    %25 = vector.load %arg4[%c0_10, %c0_11] : memref<32x192xbf16, #tpu.memory_space<vmem>>, vector<32x192xbf16>
    %cst_12 = arith.constant dense<0.000000e+00> : vector<8x192xf32>
    %26 = tpu.matmul %24, %25, %cst_12 {dimension_numbers = #tpu.dot_dimension_numbers<[1], [0], [0], [1], [0, 0, 1, 1], [], []>} : vector<8x32xbf16>, vector<32x192xbf16>, vector<8x192xf32> -> vector<8x192xf32>
    %c0_13 = arith.constant 0 : index
    %c0_14 = arith.constant 0 : index
    %27 = vector.load %arg14[%c0_13, %c0_14] : memref<8x192xf32, #tpu.memory_space<vmem>>, vector<8x192xf32>
    tpu.vector_store %arg14[%c0_13, %c0_14], %26 {strides = array<i32>} : memref<8x192xf32, #tpu.memory_space<vmem>>, vector<8x192xf32>,
    %c0_15 = arith.constant 0 : index
    %c0_16 = arith.constant 0 : index
    %28 = vector.load %arg14[%c0_15, %c0_16] : memref<8x192xf32, #tpu.memory_space<vmem>>, vector<8x16xf32>
    %c0_17 = arith.constant 0 : index
    %c64 = arith.constant 64 : index
    %29 = vector.load %arg14[%c0_17, %c64] : memref<8x192xf32, #tpu.memory_space<vmem>>, vector<8x16xf32>
    %c0_18 = arith.constant 0 : index
    %c128 = arith.constant 128 : index
    %30 = vector.load %arg14[%c0_18, %c128] : memref<8x192xf32, #tpu.memory_space<vmem>>, vector<8x16xf32>
    %cst_19 = arith.constant dense<0.000000e+00> : vector<8x8xf32>
    %31 = tpu.matmul %28, %29, %cst_19 {dimension_numbers = #tpu.dot_dimension_numbers<[1], [1], [0], [0], [0, 0, 1, 0], [], []>} : vector<8x16xf32>, vector<8x16xf32>, vector<8x8xf32> -> vector<8x8xf32>
    %cst_20 = arith.constant 2.500000e-01 : f32
    %32 = vector.broadcast %cst_20 : f32 to vector<8x8xf32>
    %33 = arith.mulf %31, %32 : vector<8x8xf32>
    %cst_21 = arith.constant dense<0xFF800000> : vector<8xf32>
    %34 = vector.multi_reduction <maximumf>, %33, %cst_21 [1] : vector<8x8xf32> to vector<8xf32>
    %35 = vector.shape_cast %34 : vector<8xf32> to vector<8x1xf32>
    %36 = vector.broadcast %35 : vector<8x1xf32> to vector<8x8xf32>
    %37 = arith.subf %33, %36 : vector<8x8xf32>
    %38 = math.exp %37 : vector<8x8xf32>
    %cst_22 = arith.constant dense<0.000000e+00> : vector<8xf32>
    %39 = vector.multi_reduction <add>, %38, %cst_22 [1] : vector<8x8xf32> to vector<8xf32>
    %40 = vector.shape_cast %39 : vector<8xf32> to vector<8x1xf32>
    %41 = tpu.reciprocal %40 {approx = true} : vector<8x1xf32> -> vector<8x1xf32>
    %42 = vector.broadcast %41 : vector<8x1xf32> to vector<8x8xf32>
    %43 = arith.mulf %38, %42 : vector<8x8xf32>
    %cst_23 = arith.constant dense<0.000000e+00> : vector<8x16xf32>
    %44 = tpu.matmul %43, %30, %cst_23 {dimension_numbers = #tpu.dot_dimension_numbers<[1], [0], [0], [1], [0, 0, 1, 1], [], []>} : vector<8x8xf32>, vector<8x16xf32>, vector<8x16xf32> -> vector<8x16xf32>
    %c0_24 = arith.constant 0 : index
    %c0_25 = arith.constant 0 : index
    %45 = vector.load %arg15[%c0_24, %c0_25] : memref<8x64xf32, #tpu.memory_space<vmem>>, vector<8x16xf32>
    tpu.vector_store %arg15[%c0_24, %c0_25], %44 {strides = array<i32>} : memref<8x64xf32, #tpu.memory_space<vmem>>, vector<8x16xf32>,
    %c0_26 = arith.constant 0 : index
    %c16 = arith.constant 16 : index
    %46 = vector.load %arg14[%c0_26, %c16] : memref<8x192xf32, #tpu.memory_space<vmem>>, vector<8x16xf32>
    %c0_27 = arith.constant 0 : index
    %c80 = arith.constant 80 : index
    %47 = vector.load %arg14[%c0_27, %c80] : memref<8x192xf32, #tpu.memory_space<vmem>>, vector<8x16xf32>
    %c0_28 = arith.constant 0 : index
    %c144 = arith.constant 144 : index
    %48 = vector.load %arg14[%c0_28, %c144] : memref<8x192xf32, #tpu.memory_space<vmem>>, vector<8x16xf32>
    %cst_29 = arith.constant dense<0.000000e+00> : vector<8x8xf32>
    %49 = tpu.matmul %46, %47, %cst_29 {dimension_numbers = #tpu.dot_dimension_numbers<[1], [1], [0], [0], [0, 0, 1, 0], [], []>} : vector<8x16xf32>, vector<8x16xf32>, vector<8x8xf32> -> vector<8x8xf32>
    %cst_30 = arith.constant 2.500000e-01 : f32
    %50 = vector.broadcast %cst_30 : f32 to vector<8x8xf32>
    %51 = arith.mulf %49, %50 : vector<8x8xf32>
    %cst_31 = arith.constant dense<0xFF800000> : vector<8xf32>
    %52 = vector.multi_reduction <maximumf>, %51, %cst_31 [1] : vector<8x8xf32> to vector<8xf32>
    %53 = vector.shape_cast %52 : vector<8xf32> to vector<8x1xf32>
    %54 = vector.broadcast %53 : vector<8x1xf32> to vector<8x8xf32>
    %55 = arith.subf %51, %54 : vector<8x8xf32>
    %56 = math.exp %55 : vector<8x8xf32>
    %cst_32 = arith.constant dense<0.000000e+00> : vector<8xf32>
    %57 = vector.multi_reduction <add>, %56, %cst_32 [1] : vector<8x8xf32> to vector<8xf32>
    %58 = vector.shape_cast %57 : vector<8xf32> to vector<8x1xf32>
    %59 = tpu.reciprocal %58 {approx = true} : vector<8x1xf32> -> vector<8x1xf32>
    %60 = vector.broadcast %59 : vector<8x1xf32> to vector<8x8xf32>
    %61 = arith.mulf %56, %60 : vector<8x8xf32>
    %cst_33 = arith.constant dense<0.000000e+00> : vector<8x16xf32>
    %62 = tpu.matmul %61, %48, %cst_33 {dimension_numbers = #tpu.dot_dimension_numbers<[1], [0], [0], [1], [0, 0, 1, 1], [], []>} : vector<8x8xf32>, vector<8x16xf32>, vector<8x16xf32> -> vector<8x16xf32>
    %c0_34 = arith.constant 0 : index
    %c16_35 = arith.constant 16 : index
    %63 = vector.load %arg15[%c0_34, %c16_35] : memref<8x64xf32, #tpu.memory_space<vmem>>, vector<8x16xf32>
    tpu.vector_store %arg15[%c0_34, %c16_35], %62 {strides = array<i32>} : memref<8x64xf32, #tpu.memory_space<vmem>>, vector<8x16xf32>,
    %c0_36 = arith.constant 0 : index
    %c32 = arith.constant 32 : index
    %64 = vector.load %arg14[%c0_36, %c32] : memref<8x192xf32, #tpu.memory_space<vmem>>, vector<8x16xf32>
    %c0_37 = arith.constant 0 : index
    %c96 = arith.constant 96 : index
    %65 = vector.load %arg14[%c0_37, %c96] : memref<8x192xf32, #tpu.memory_space<vmem>>, vector<8x16xf32>
    %c0_38 = arith.constant 0 : index
    %c160 = arith.constant 160 : index
    %66 = vector.load %arg14[%c0_38, %c160] : memref<8x192xf32, #tpu.memory_space<vmem>>, vector<8x16xf32>
    %cst_39 = arith.constant dense<0.000000e+00> : vector<8x8xf32>
    %67 = tpu.matmul %64, %65, %cst_39 {dimension_numbers = #tpu.dot_dimension_numbers<[1], [1], [0], [0], [0, 0, 1, 0], [], []>} : vector<8x16xf32>, vector<8x16xf32>, vector<8x8xf32> -> vector<8x8xf32>
    %cst_40 = arith.constant 2.500000e-01 : f32
    %68 = vector.broadcast %cst_40 : f32 to vector<8x8xf32>
    %69 = arith.mulf %67, %68 : vector<8x8xf32>
    %cst_41 = arith.constant dense<0xFF800000> : vector<8xf32>
    %70 = vector.multi_reduction <maximumf>, %69, %cst_41 [1] : vector<8x8xf32> to vector<8xf32>
    %71 = vector.shape_cast %70 : vector<8xf32> to vector<8x1xf32>
    %72 = vector.broadcast %71 : vector<8x1xf32> to vector<8x8xf32>
    %73 = arith.subf %69, %72 : vector<8x8xf32>
    %74 = math.exp %73 : vector<8x8xf32>
    %cst_42 = arith.constant dense<0.000000e+00> : vector<8xf32>
    %75 = vector.multi_reduction <add>, %74, %cst_42 [1] : vector<8x8xf32> to vector<8xf32>
    %76 = vector.shape_cast %75 : vector<8xf32> to vector<8x1xf32>
    %77 = tpu.reciprocal %76 {approx = true} : vector<8x1xf32> -> vector<8x1xf32>
    %78 = vector.broadcast %77 : vector<8x1xf32> to vector<8x8xf32>
    %79 = arith.mulf %74, %78 : vector<8x8xf32>
    %cst_43 = arith.constant dense<0.000000e+00> : vector<8x16xf32>
    %80 = tpu.matmul %79, %66, %cst_43 {dimension_numbers = #tpu.dot_dimension_numbers<[1], [0], [0], [1], [0, 0, 1, 1], [], []>} : vector<8x8xf32>, vector<8x16xf32>, vector<8x16xf32> -> vector<8x16xf32>
    %c0_44 = arith.constant 0 : index
    %c32_45 = arith.constant 32 : index
    %81 = vector.load %arg15[%c0_44, %c32_45] : memref<8x64xf32, #tpu.memory_space<vmem>>, vector<8x16xf32>
    tpu.vector_store %arg15[%c0_44, %c32_45], %80 {strides = array<i32>} : memref<8x64xf32, #tpu.memory_space<vmem>>, vector<8x16xf32>,
    %c0_46 = arith.constant 0 : index
    %c48 = arith.constant 48 : index
    %82 = vector.load %arg14[%c0_46, %c48] : memref<8x192xf32, #tpu.memory_space<vmem>>, vector<8x16xf32>
    %c0_47 = arith.constant 0 : index
    %c112 = arith.constant 112 : index
    %83 = vector.load %arg14[%c0_47, %c112] : memref<8x192xf32, #tpu.memory_space<vmem>>, vector<8x16xf32>
    %c0_48 = arith.constant 0 : index
    %c176 = arith.constant 176 : index
    %84 = vector.load %arg14[%c0_48, %c176] : memref<8x192xf32, #tpu.memory_space<vmem>>, vector<8x16xf32>
    %cst_49 = arith.constant dense<0.000000e+00> : vector<8x8xf32>
    %85 = tpu.matmul %82, %83, %cst_49 {dimension_numbers = #tpu.dot_dimension_numbers<[1], [1], [0], [0], [0, 0, 1, 0], [], []>} : vector<8x16xf32>, vector<8x16xf32>, vector<8x8xf32> -> vector<8x8xf32>
    %cst_50 = arith.constant 2.500000e-01 : f32
    %86 = vector.broadcast %cst_50 : f32 to vector<8x8xf32>
    %87 = arith.mulf %85, %86 : vector<8x8xf32>
    %cst_51 = arith.constant dense<0xFF800000> : vector<8xf32>
    %88 = vector.multi_reduction <maximumf>, %87, %cst_51 [1] : vector<8x8xf32> to vector<8xf32>
    %89 = vector.shape_cast %88 : vector<8xf32> to vector<8x1xf32>
    %90 = vector.broadcast %89 : vector<8x1xf32> to vector<8x8xf32>
    %91 = arith.subf %87, %90 : vector<8x8xf32>
    %92 = math.exp %91 : vector<8x8xf32>
    %cst_52 = arith.constant dense<0.000000e+00> : vector<8xf32>
    %93 = vector.multi_reduction <add>, %92, %cst_52 [1] : vector<8x8xf32> to vector<8xf32>
    %94 = vector.shape_cast %93 : vector<8xf32> to vector<8x1xf32>
    %95 = tpu.reciprocal %94 {approx = true} : vector<8x1xf32> -> vector<8x1xf32>
    %96 = vector.broadcast %95 : vector<8x1xf32> to vector<8x8xf32>
    %97 = arith.mulf %92, %96 : vector<8x8xf32>
    %cst_53 = arith.constant dense<0.000000e+00> : vector<8x16xf32>
    %98 = tpu.matmul %97, %84, %cst_53 {dimension_numbers = #tpu.dot_dimension_numbers<[1], [0], [0], [1], [0, 0, 1, 1], [], []>} : vector<8x8xf32>, vector<8x16xf32>, vector<8x16xf32> -> vector<8x16xf32>
    %c0_54 = arith.constant 0 : index
    %c48_55 = arith.constant 48 : index
    %99 = vector.load %arg15[%c0_54, %c48_55] : memref<8x64xf32, #tpu.memory_space<vmem>>, vector<8x16xf32>
    tpu.vector_store %arg15[%c0_54, %c48_55], %98 {strides = array<i32>} : memref<8x64xf32, #tpu.memory_space<vmem>>, vector<8x16xf32>,
    %c0_56 = arith.constant 0 : index
    %c0_57 = arith.constant 0 : index
    %100 = vector.load %arg15[%c0_56, %c0_57] : memref<8x64xf32, #tpu.memory_space<vmem>>, vector<8x64xf32>
    %101 = arith.truncf %100 : vector<8x64xf32> to vector<8x64xbf16>
    %c0_58 = arith.constant 0 : index
    %c0_59 = arith.constant 0 : index
    %102 = vector.load %arg5[%c0_58, %c0_59] : memref<64x32xbf16, #tpu.memory_space<vmem>>, vector<64x32xbf16>
    %cst_60 = arith.constant dense<0.000000e+00> : vector<8x32xf32>
    %103 = tpu.matmul %101, %102, %cst_60 {dimension_numbers = #tpu.dot_dimension_numbers<[1], [0], [0], [1], [0, 0, 1, 1], [], []>} : vector<8x64xbf16>, vector<64x32xbf16>, vector<8x32xf32> -> vector<8x32xf32>
    %c0_61 = arith.constant 0 : index
    %c0_62 = arith.constant 0 : index
    %104 = vector.load %arg6[%c0_61, %c0_62] : memref<1x32xf32, #tpu.memory_space<vmem>>, vector<1x32xf32>
    %105 = vector.broadcast %104 : vector<1x32xf32> to vector<8x32xf32>
    %106 = arith.addf %103, %105 : vector<8x32xf32>
    %107 = arith.addf %106, %1 : vector<8x32xf32>
    %c0_63 = arith.constant 0 : index
    %c0_64 = arith.constant 0 : index
    %108 = vector.load %arg7[%c0_63, %c0_64] : memref<1x32xf32, #tpu.memory_space<vmem>>, vector<1x32xf32>
    %c0_65 = arith.constant 0 : index
    %c0_66 = arith.constant 0 : index
    %109 = vector.load %arg8[%c0_65, %c0_66] : memref<1x32xf32, #tpu.memory_space<vmem>>, vector<1x32xf32>
    %cst_67 = arith.constant dense<0.000000e+00> : vector<8xf32>
    %110 = vector.multi_reduction <add>, %107, %cst_67 [1] : vector<8x32xf32> to vector<8xf32>
    %111 = vector.shape_cast %110 : vector<8xf32> to vector<8x1xf32>
    %cst_68 = arith.constant 3.200000e+01 : f32
    %112 = vector.broadcast %cst_68 : f32 to vector<8x1xf32>
    %113 = arith.divf %111, %112 : vector<8x1xf32>
    %114 = vector.broadcast %113 : vector<8x1xf32> to vector<8x32xf32>
    %115 = arith.subf %107, %114 : vector<8x32xf32>
    %116 = arith.mulf %115, %115 : vector<8x32xf32>
    %cst_69 = arith.constant dense<0.000000e+00> : vector<8xf32>
    %117 = vector.multi_reduction <add>, %116, %cst_69 [1] : vector<8x32xf32> to vector<8xf32>
    %118 = vector.shape_cast %117 : vector<8xf32> to vector<8x1xf32>
    %cst_70 = arith.constant 3.200000e+01 : f32
    %119 = vector.broadcast %cst_70 : f32 to vector<8x1xf32>
    %120 = arith.divf %118, %119 : vector<8x1xf32>
    %cst_71 = arith.constant 9.99999974E-6 : f32
    %121 = vector.broadcast %cst_71 : f32 to vector<8x1xf32>
    %122 = arith.addf %120, %121 : vector<8x1xf32>
    %123 = math.rsqrt %122 : vector<8x1xf32>
    %124 = vector.broadcast %123 : vector<8x1xf32> to vector<8x32xf32>
    %125 = arith.mulf %115, %124 : vector<8x32xf32>
    %126 = vector.broadcast %108 : vector<1x32xf32> to vector<8x32xf32>
    %127 = arith.mulf %125, %126 : vector<8x32xf32>
    %128 = vector.broadcast %109 : vector<1x32xf32> to vector<8x32xf32>
    %129 = arith.addf %127, %128 : vector<8x32xf32>
    %130 = arith.truncf %129 : vector<8x32xf32> to vector<8x32xbf16>
    %c0_72 = arith.constant 0 : index
    %c0_73 = arith.constant 0 : index
    %131 = vector.load %arg9[%c0_72, %c0_73] : memref<32x64xbf16, #tpu.memory_space<vmem>>, vector<32x64xbf16>
    %cst_74 = arith.constant dense<0.000000e+00> : vector<8x64xf32>
    %132 = tpu.matmul %130, %131, %cst_74 {dimension_numbers = #tpu.dot_dimension_numbers<[1], [0], [0], [1], [0, 0, 1, 1], [], []>} : vector<8x32xbf16>, vector<32x64xbf16>, vector<8x64xf32> -> vector<8x64xf32>
    %c0_75 = arith.constant 0 : index
    %c0_76 = arith.constant 0 : index
    %133 = vector.load %arg10[%c0_75, %c0_76] : memref<1x64xf32, #tpu.memory_space<vmem>>, vector<1x64xf32>
    %134 = vector.broadcast %133 : vector<1x64xf32> to vector<8x64xf32>
    %135 = arith.addf %132, %134 : vector<8x64xf32>
    %cst_77 = arith.constant 5.000000e-01 : f32
    %136 = vector.broadcast %cst_77 : f32 to vector<8x64xf32>
    %137 = arith.mulf %136, %135 : vector<8x64xf32>
    %cst_78 = arith.constant 4.471500e-02 : f32
    %138 = vector.broadcast %cst_78 : f32 to vector<8x64xf32>
    %139 = arith.mulf %138, %135 : vector<8x64xf32>
    %140 = arith.mulf %139, %135 : vector<8x64xf32>
    %141 = arith.mulf %140, %135 : vector<8x64xf32>
    %142 = arith.addf %135, %141 : vector<8x64xf32>
    %cst_79 = arith.constant 0.797884583 : f32
    %143 = vector.broadcast %cst_79 : f32 to vector<8x64xf32>
    %144 = arith.mulf %143, %142 : vector<8x64xf32>
    %145 = math.tanh %144 : vector<8x64xf32>
    %cst_80 = arith.constant 1.000000e+00 : f32
    %146 = vector.broadcast %cst_80 : f32 to vector<8x64xf32>
    %147 = arith.addf %146, %145 : vector<8x64xf32>
    %148 = arith.mulf %137, %147 : vector<8x64xf32>
    %149 = arith.truncf %148 : vector<8x64xf32> to vector<8x64xbf16>
    %c0_81 = arith.constant 0 : index
    %c0_82 = arith.constant 0 : index
    %150 = vector.load %arg11[%c0_81, %c0_82] : memref<64x32xbf16, #tpu.memory_space<vmem>>, vector<64x32xbf16>
    %cst_83 = arith.constant dense<0.000000e+00> : vector<8x32xf32>
    %151 = tpu.matmul %149, %150, %cst_83 {dimension_numbers = #tpu.dot_dimension_numbers<[1], [0], [0], [1], [0, 0, 1, 1], [], []>} : vector<8x64xbf16>, vector<64x32xbf16>, vector<8x32xf32> -> vector<8x32xf32>
    %c0_84 = arith.constant 0 : index
    %c0_85 = arith.constant 0 : index
    %152 = vector.load %arg12[%c0_84, %c0_85] : memref<1x32xf32, #tpu.memory_space<vmem>>, vector<1x32xf32>
    %153 = vector.broadcast %152 : vector<1x32xf32> to vector<8x32xf32>
    %154 = arith.addf %151, %153 : vector<8x32xf32>
    %155 = arith.addf %154, %107 : vector<8x32xf32>
    %c0_86 = arith.constant 0 : index
    %c0_87 = arith.constant 0 : index
    %c0_88 = arith.constant 0 : index
    %156 = vector.load %arg13[%c0_86, %c0_87, %c0_88] : memref<1x8x32xf32, #tpu.memory_space<vmem>>, vector<1x8x32xf32>
    %157 = vector.shape_cast %156 : vector<1x8x32xf32> to vector<8x32xf32>
    %158 = vector.shape_cast %155 : vector<8x32xf32> to vector<1x8x32xf32>
    tpu.vector_store %arg13[%c0_86, %c0_87, %c0_88], %158 {strides = array<i32>} : memref<1x8x32xf32, #tpu.memory_space<vmem>>, vector<1x8x32xf32>,
    return
  }
  func.func @transform_0(%arg0: i32) -> (i32, i32, i32) {
    %c0_i32 = arith.constant 0 : i32
    %c0_i32_0 = arith.constant 0 : i32
    %c0_i32_1 = arith.constant 0 : i32
    return %arg0, %c0_i32, %c0_i32_0 : i32, i32, i32
  }
  func.func @transform_1(%arg0: i32) -> (i32, i32) {
    %c0_i32 = arith.constant 0 : i32
    %c0_i32_0 = arith.constant 0 : i32
    %c0_i32_1 = arith.constant 0 : i32
    return %c0_i32, %c0_i32_0 : i32, i32
  }
  func.func @transform_2(%arg0: i32) -> (i32, i32) {
    %c0_i32 = arith.constant 0 : i32
    %c0_i32_0 = arith.constant 0 : i32
    %c0_i32_1 = arith.constant 0 : i32
    return %c0_i32, %c0_i32_0 : i32, i32
  }
  func.func @transform_3(%arg0: i32) -> (i32, i32) {
    %c0_i32 = arith.constant 0 : i32
    %c0_i32_0 = arith.constant 0 : i32
    %c0_i32_1 = arith.constant 0 : i32
    return %c0_i32, %c0_i32_0 : i32, i32
  }
  func.func @transform_4(%arg0: i32) -> (i32, i32) {
    %c0_i32 = arith.constant 0 : i32
    %c0_i32_0 = arith.constant 0 : i32
    %c0_i32_1 = arith.constant 0 : i32
    return %c0_i32, %c0_i32_0 : i32, i32
  }
  func.func @transform_5(%arg0: i32) -> (i32, i32) {
    %c0_i32 = arith.constant 0 : i32
    %c0_i32_0 = arith.constant 0 : i32
    %c0_i32_1 = arith.constant 0 : i32
    return %c0_i32, %c0_i32_0 : i32, i32
  }
  func.func @transform_6(%arg0: i32) -> (i32, i32) {
    %c0_i32 = arith.constant 0 : i32
    %c0_i32_0 = arith.constant 0 : i32
    %c0_i32_1 = arith.constant 0 : i32
    return %c0_i32, %c0_i32_0 : i32, i32
  }
  func.func @transform_7(%arg0: i32) -> (i32, i32) {
    %c0_i32 = arith.constant 0 : i32
    %c0_i32_0 = arith.constant 0 : i32
    %c0_i32_1 = arith.constant 0 : i32
    return %c0_i32, %c0_i32_0 : i32, i32
  }
  func.func @transform_8(%arg0: i32) -> (i32, i32) {
    %c0_i32 = arith.constant 0 : i32
    %c0_i32_0 = arith.constant 0 : i32
    %c0_i32_1 = arith.constant 0 : i32
    return %c0_i32, %c0_i32_0 : i32, i32
  }
  func.func @transform_9(%arg0: i32) -> (i32, i32) {
    %c0_i32 = arith.constant 0 : i32
    %c0_i32_0 = arith.constant 0 : i32
    %c0_i32_1 = arith.constant 0 : i32
    return %c0_i32, %c0_i32_0 : i32, i32
  }
  func.func @transform_10(%arg0: i32) -> (i32, i32) {
    %c0_i32 = arith.constant 0 : i32
    %c0_i32_0 = arith.constant 0 : i32
    %c0_i32_1 = arith.constant 0 : i32
    return %c0_i32, %c0_i32_0 : i32, i32
  }
  func.func @transform_11(%arg0: i32) -> (i32, i32) {
    %c0_i32 = arith.constant 0 : i32
    %c0_i32_0 = arith.constant 0 : i32
    %c0_i32_1 = arith.constant 0 : i32
    return %c0_i32, %c0_i32_0 : i32, i32
  }
  func.func @transform_12(%arg0: i32) -> (i32, i32, i32) {
    %c0_i32 = arith.constant 0 : i32
    %c0_i32_0 = arith.constant 0 : i32
    %c0_i32_1 = arith.constant 0 : i32
    return %arg0, %c0_i32, %c0_i32_0 : i32, i32, i32
  }
}

</mosaic_0001>

<bundles_post_ra>
// kernel: transformer_forward.3
= control target key start
LH: loop header
LB: loop body
LE: loop exit
PB: predicated region body
PF: predicated region fallthrough
CT: control target
= control target key end

     0   :  { %s2202_s0 = inlined_call_operand.vmem [shape: f32[2,8,32], index: 0, kind: input, shape index: {}]   ;;  %s2203_s1 = inlined_call_operand.vmem [shape: f32[1,32], index: 1, kind: input, shape index: {}]   ;;  %s2204_s2 = inlined_call_operand.vmem [shape: f32[1,32], index: 2, kind: input, shape index: {}]   ;;  %s2205_s3 = inlined_call_operand.vmem [shape: bf16[32,192], index: 3, kind: input, shape index: {}]   ;;  %s2206_s4 = inlined_call_operand.vmem [shape: bf16[64,32], index: 4, kind: input, shape index: {}]   ;;  %s2207_s5 = inlined_call_operand.vmem [shape: f32[1,32], index: 5, kind: input, shape index: {}]   ;;  %s2208_s6 = inlined_call_operand.vmem [shape: f32[1,32], index: 6, kind: input, shape index: {}]   ;;  %s2209_s7 = inlined_call_operand.vmem [shape: f32[1,32], index: 7, kind: input, shape index: {}]   ;;  %s2210_s8 = inlined_call_operand.vmem [shape: bf16[32,64], index: 8, kind: input, shape index: {}]   ;;  %s2211_s9 = inlined_call_operand.vmem [shape: f32[1,64], index: 9, kind: input, shape index: {}]   ;;  %s2212_s10 = inlined_call_operand.vmem [shape: bf16[64,32], index: 10, kind: input, shape index: {}]   ;;  %s2213_s11 = inlined_call_operand.vmem [shape: f32[1,32], index: 11, kind: input, shape index: {}]   ;;  %s2214_s12 = inlined_call_operand.hbm [shape: f32[2,8,32], index: 12, kind: output, shape index: {}]  }
   0x1   :  { %2216 = sst [smem:[#allocation7_spill]] %s2202_s0 }
   0x2   :  { %2217 = sst [smem:[#allocation8_spill]] %s2203_s1 }
   0x3   :  { %17 = vsyncpa [#allocation5], 0 }
   0x4   :  { %19 = vsyncpa [#allocation5 + $0x1], 0  ;;  %s1932_s21 = smov 0   ;;  %s1934_s22 = smov 0  }
   0x5   :  { %s1936_s23 = smov 0   ;;  %s1938_s24 = smov 0  }
   0x6 LB: > { %s1953_s25 = sadd.s32 4294967295, %s1854_s24   ;;  %s1557_s26 = sadd.s32 4294967294, %s1854_s24   ;;  %s1854_s24 = sphi %s1938_s24, %s2226_s24   ;;  %s1850_s23 = sphi %s1936_s23, %s2225_s23   ;;  %s1846_s22 = sphi %s1934_s22, %s2224_s22   ;;  %s1842_s21 = sphi %s1932_s21, %s2223_s21  }
   0x7   : > { %s1957_s27 = sadd.s32 1, %s1854_s24   ;;  %s289_s28 = sadd.s32 1, %s1850_s23 }
   0x8   : > { %s286_s29 = ssub.s32 %s1854_s24, %s1957_s27  ;;  %p299_p0 = scmp.ne.s32.totalorder %s1850_s23, %s1846_s22 }
   0x9   : > { %p287_p1 = scmp.eq.s32.totalorder %s286_s29, 0  ;;  %p300_p2 = scmp.eq.s32.totalorder %s1953_s25, 1 }
   0xa   : > { %p305_p3 = scmp.ne.s32.totalorder %s1846_s22, %s1842_s21  ;;  %p306_p4 = scmp.eq.s32.totalorder %s1557_s26, 1 }
   0xb   : > { %s1968_s30 = scalar_select %p287_p1, %s1850_s23, %s289_s28  }
   0xc   : > { %p1970_p5 = por %p300_p2, %p299_p0  ;;  %p1974_p6 = por %p306_p4, %p305_p3 }
   0xd   : > { %p1560_p7 = scmp.ge.s32.totalorder %s1854_s24, 1  ;;  %p364_p8 = scmp.lt.s32.totalorder %s1854_s24, 3 }
   0xf   : > { %p365_p9 = pnand %p1560_p7, %p364_p8 }
  0x10   : > { %p405_p10 = scmp.lt.s32.totalorder (!%p365_p9), %s1953_s25, 1  ;;  %vm413_vm0 = vcmask (!%p365_p9), 261120   ;;  %s2220_s0 = sld [smem:[#allocation7_spill]] (!%p365_p9)  ;;  %v1754_v7 = vld [vmem:[%s2205_s3 + $0x4] ss:$8 sps:$4 sm:$0xff] (!%p365_p9)   ;;  %v1856_v10 = vmov (!%p365_p9), 0  }
  0x11   : > { %368 = sbr.rel (%p365_p9) target bundleno = 3609 (0xe19), region = 68  ;;  %v1756_v8 = vld [vmem:[%s2205_s3] ss:$8 sps:$4 sm:$0xff] (!%p365_p9)   ;;  %v1757_v9 = vld [vmem:[%s2205_s3 + $0x14] ss:$8 sps:$4 sm:$0xff] (!%p365_p9)   ;;  %470 = vmatprep.subr.bf16.mxu0 (!%p365_p9), %v1754_v7  ;;  %502 = vmatprep.mubr.bf16.mxu0 (!%p365_p9), %v1856_v10  ;;  %s2221_s1 = sld [smem:[#allocation8_spill]] (!%p365_p9) }
  0x12   : > { %471 = vmatpush1.bf16.msra.mxu0 (!%p365_p9), %v1756_v8  ;;  %v1759_v11 = vld [vmem:[%s2205_s3 + $0x10] ss:$8 sps:$4 sm:$0xff] (!%p365_p9)   ;;  %v1564_v18 = vld [vmem:[%s2204_s2] ss:$0 sm:$0xff] (!%p365_p9)  ;;  %v1857_v22 = vmov (!%p365_p9), 0.0   ;;  %vm1858_vm1 = vmmov (!%p365_p9), 0  }
  0x13   : > { %472 = vmatprep.subr.bf16.mxu0 (!%p365_p9), %v1757_v9  ;;  %1633 = vmatprep.subr.mxu1 (!%p365_p9), %v1857_v22  ;;  %vm512_vm2 = vcmask (!%p365_p9), 523264   ;;  %s2215_s29 = smov (!%p365_p9), 48   ;;  %vm519_vm3 = vcmask (!%p365_p9), 130048   ;;  %vm595_vm4 = vcmask (!%p365_p9), 64512   ;;  %s1862_s17 = smov (!%p365_p9), 32   ;;  %vm855_vm5 = vcmask (!%p365_p9), 261248  }
  0x14   : > { %1635 = vmatprep.mubr.msk.f32.mxu1 (!%p365_p9), %vm1858_vm1, %v1857_v22  ;;  %s1863_s18 = smov (!%p365_p9), 96   ;;  %s1865_s20 = smov (!%p365_p9), 80   ;;  %vm1031_vm6 = vcmask (!%p365_p9), 392448   ;;  %vm1207_vm7 = vcmask (!%p365_p9), 523648  }
  0x15   : > { %s2222_s26 = smov (!%p365_p9), 48  }
  0x16   : > { %473 = vmatpush1.bf16.msra.mxu0 (!%p365_p9), %v1759_v11 }
  0x17   : > { %v1563_v16 = vld [vmem:[%s2221_s1] ss:$0 sm:$0xff] (!%p365_p9)  ;;  %1658 = vmatprep.subr.mxu0 (!%p365_p9), %v1857_v22 }
  0x18   : > { %s406_s15 = scalar_select %p405_p10, %s1953_s25, 1 }
  0x1a   : > { %s1562_s16 = sshll.u32 %s406_s15, 3  ;;  %s1860_s15 = smov 64  }
  0x1b   : > { %s408_s19 = scalar_lea.vmem %s2220_s0, %s1562_s16  ;;  %s1861_s16 = smov 112  }
  0x1c   : > { %v1985_v0 = vld [vmem:[%s408_s19] sm:$0xff]  ;;  %s1864_s19 = smov 16  }
  0x1d   : > { %v414_v1 = vsel %vm413_vm0, %v1985_v0, 0.0 }
  0x1e   : > { %415 = vadd.xlane.f32.xlu0 %v414_v1 }
  0xab   : > { %v416_v2 = vpop.xlane.xlu0 %415 }
  0xac   : > { %v418_v3 = vmul.f32 0.03125, %v416_v2 }
  0xae   : > { %v419_v4 = vsub.f32 %v1985_v0, %v418_v3 }
  0xb0   : > { %v420_v5 = vmul.f32 %v419_v4, %v419_v4 }
  0xb2   : > { %v421_v6 = vsel %vm413_vm0, %v420_v5, 0.0 }
  0xb3   : > { %422 = vadd.xlane.f32.xlu0 %v421_v6 }
 0x140   : > { %v423_v12 = vpop.xlane.xlu0 %422 }
 0x141   : > { %v424_v13 = vmul.f32 0.03125, %v423_v12 }
 0x143   : > { %v425_v14 = vadd.f32 1e-05, %v424_v13 }
 0x145   : > { %1770 = vrsqrt.f32 %v425_v14 }
 0x14f   : > { %v1771_v15 = vpop.eup %1770 }
 0x150   : > { %v427_v17 = vmul.f32 %v1771_v15, %v419_v4 }
 0x152   : > { %v434_v19 = vmul.f32 %v1563_v16, %v427_v17 }
 0x154   : > { %v441_v20 = vadd.f32 %v1564_v18, %v434_v19 }
 0x156   : > { %v442_v21 = vpack.c.bf16 %v441_v20, %v441_v20 }
 0x158   : > { %1569 = vmatmul.mubr.msk.bf16.vlgmr.msra.gmra.mrb[0].mxu0 %vm413_vm0, %v442_v21 }
 0x159   : > { %1660 = vmatprep.mubr.msk.f32.mxu0 %vm1858_vm1, %v1857_v22 }
 0x22b   : > { %v2016_v23 = vpop.f32.mrb[0].mxu0 }
 0x22c   : > { %v506_v24 = vpop.f32.mrb[1].mxu0  ;;  %686 = vrot.lane.b32.xlu0 %v2016_v23, %s2215_s29  ;;  %517 = vrot.lane.b32.xlu1 %v2016_v23, %s1860_s15 }
 0x22d   : > { %513 = vst.msk [vmem:[#allocation2 + $0x8] sm:$0xff] %vm512_vm2, %v506_v24  ;;  %v508_v25 = vpop.f32.mrb[2].mxu0 }
 0x22e   : > { %v509_v26 = vpop.f32.mrb[3].mxu0 }
 0x234   : > { %v2026_v28 = vld [vmem:[#allocation2 + $0x8] sm:$0xff] }
 0x29e   : > { %v518_v27 = vpop.permute.xlu1 %517  ;;  %v687_v38 = vpop.permute.xlu0 %686 }
 0x29f   : > { %1634 = vmatpush3.xpose.msk.msra.mxu1 %vm519_vm3, %v518_v27 }
 0x2a0   : > { %1638 = vmatprep.subr.mxu1 %v1857_v22 }
 0x2a2   : > { %1636 = vmatmul.mubr.msk.f32.vlgmr.msra.gmra.mrb[0].mxu1 %vm519_vm3, %v2016_v23 }
 0x2a3   : > { %1639 = vmatpush3.msra.mxu1 %v2026_v28  ;;  %1640 = vmatprep.mubr.msk.f32.mxu1 %vm1858_vm1, %v1857_v22 }
 0x2a4   : > { %1643 = vmatprep.subr.mxu1 %v1857_v22 }
 0x375   : > { %v590_v29 = vpop.f32.mrb[0].mxu1 }
 0x376   : > { %v594_v30 = vmul.f32 0.25, %v590_v29  ;;  %v1637_v31 = vpop.f32.mrb[1].mxu1  ;;  %v1760_v29 = vld [vmem:[%s2206_s4] sm:$0xff]  }
 0x377   : > { %v1762_v31 = vld [vmem:[%s2206_s4 + $0x10] sm:$0xff]  }
 0x378   : > { %v596_v32 = vsel %vm595_vm4, %v594_v30, -inf }
 0x379   : > { %597 = vmax.xlane.f32.xlu1 %v596_v32  ;;  %v1763_v32 = vld [vmem:[%s2206_s4 + $0x18] sm:$0xff]  }
 0x38a   : > { %775 = vrot.lane.b32.xlu1 %v2026_v28, %s1861_s16 }
 0x38e   : > { %862 = vrot.lane.b32.xlu1 %v2016_v23, %s1862_s17 }
 0x392   : > { %860 = vrot.lane.b32.xlu1 %v2016_v23, %s1863_s18 }
 0x406   : > { %v598_v33 = vpop.xlane.xlu1 %597 }
 0x407   : > { %v599_v34 = vsub.f32 %v594_v30, %v598_v33  ;;  %v1761_v30 = vld [vmem:[%s2206_s4 + $0x8] sm:$0xff]  }
 0x409   : > { %v600_v35 = vmul.f32 1.442695, %v599_v34 }
 0x40a   : > { %v776_v43 = vpop.permute.xlu1 %775 }
 0x40b   : > { %1772 = vpow2.f32 %v600_v35 }
 0x40e   : > { %v863_v55 = vpop.permute.xlu1 %862 }
 0x412   : > { %v861_v56 = vpop.permute.xlu1 %860 }
 0x415   : > { %v1773_v36 = vpop.eup %1772 }
 0x416   : > { %v602_v37 = vsel %vm595_vm4, %v1773_v36, 0.0 }
 0x417   : > { %603 = vadd.xlane.f32.xlu0 %v602_v37 }
 0x42d   : > { %684 = vrot.lane.b32.xlu0 %v2016_v23, %s1861_s16  ;;  %s1866_s16 = smov [#allocation4]  }
 0x4a4   : > { %v604_v39 = vpop.xlane.xlu0 %603 }
 0x4a5   : > { %1774 = vrcp.f32 %v604_v39 }
 0x4a8   : > { %v685_v42 = vpop.permute.xlu0 %684 }
 0x4af   : > { %v1775_v40 = vpop.eup %1774 }
 0x4b0   : > { %v606_v41 = vmul.f32 %v1775_v40, %v1773_v36 }
 0x4b2   : > { %1641 = vmatmul.mubr.msk.f32.vlgmr.msra.gmra.mrb[2].mxu1 %vm595_vm4, %v606_v41  ;;  %v1582_v41 = vld [vmem:[%s2207_s5] ss:$0 sm:$0xff] }
 0x4b3   : > { %1644 = vmatpush3.xpose.msk.msra.mxu1 %vm519_vm3, %v687_v38  ;;  %1645 = vmatprep.mubr.msk.f32.mxu1 %vm1858_vm1, %v1857_v22 }
 0x4b4   : > { %1648 = vmatprep.subr.mxu1 %v1857_v22 }
 0x4b6   : > { %1646 = vmatmul.mubr.msk.f32.vlgmr.msra.gmra.mrb[4].mxu1 %vm519_vm3, %v685_v42 }
 0x4b7   : > { %1649 = vmatpush3.msra.mxu1 %v776_v43  ;;  %1650 = vmatprep.mubr.msk.f32.mxu1 %vm1858_vm1, %v1857_v22 }
 0x4b8   : > { %1653 = vmatprep.subr.mxu1 %v1857_v22 }
 0x585   : > { %v676_v44 = vpop.f32.mrb[2].mxu1 }
 0x586   : > { %680 = vst.msk [vmem:[#allocation3] sm:$0xff] %vm519_vm3, %v676_v44  ;;  %v1642_v45 = vpop.f32.mrb[3].mxu1 }
 0x589   : > { %v758_v46 = vpop.f32.mrb[4].mxu1 }
 0x58a   : > { %v762_v47 = vmul.f32 0.25, %v758_v46  ;;  %v1647_v48 = vpop.f32.mrb[5].mxu1 }
 0x58c   : > { %v763_v49 = vsel %vm595_vm4, %v762_v47, -inf }
 0x58d   : > { %764 = vmax.xlane.f32.xlu0 %v763_v49 }
 0x5a3   : > { %1038 = vrot.lane.b32.xlu0 %v2016_v23, %s1864_s19 }
 0x61a   : > { %v765_v50 = vpop.xlane.xlu0 %764 }
 0x61b   : > { %v766_v51 = vsub.f32 %v762_v47, %v765_v50 }
 0x61d   : > { %v767_v52 = vmul.f32 1.442695, %v766_v51 }
 0x61e   : > { %v1039_v60 = vpop.permute.xlu0 %1038 }
 0x61f   : > { %1776 = vpow2.f32 %v767_v52 }
 0x629   : > { %v1777_v53 = vpop.eup %1776 }
 0x62a   : > { %v769_v54 = vsel %vm595_vm4, %v1777_v53, 0.0 }
 0x62b   : > { %770 = vadd.xlane.f32.xlu1 %v769_v54  ;;  %v1764_v54 = vld [vmem:[%s2210_s8] sm:$0xff]  }
 0x63c   : > { %1036 = vrot.lane.b32.xlu1 %v2016_v23, %s1865_s20 }
 0x6b8   : > { %v771_v57 = vpop.xlane.xlu1 %770 }
 0x6b9   : > { %1778 = vrcp.f32 %v771_v57 }
 0x6bc   : > { %v1037_v61 = vpop.permute.xlu1 %1036 }
 0x6c3   : > { %v1779_v58 = vpop.eup %1778 }
 0x6c4   : > { %v773_v59 = vmul.f32 %v1779_v58, %v1777_v53 }
 0x6c6   : > { %1651 = vmatmul.mubr.msk.f32.vlgmr.msra.gmra.mrb[6].mxu1 %vm595_vm4, %v773_v59  ;;  %v1588_v59 = vld [vmem:[%s2208_s6] ss:$0 sm:$0xff] }
 0x6c7   : > { %1654 = vmatpush3.xpose.msk.msra.mxu1 %vm519_vm3, %v863_v55  ;;  %1655 = vmatprep.mubr.msk.f32.mxu1 %vm1858_vm1, %v1857_v22 }
 0x6c8   : > { %1663 = vmatprep.subr.mxu1 %v1857_v22 }
 0x6ca   : > { %1656 = vmatmul.mubr.msk.f32.vlgmr.msra.gmra.mrb[8].mxu1 %vm519_vm3, %v861_v56 }
 0x6cb   : > { %1664 = vmatpush3.xpose.msk.msra.mxu1 %vm519_vm3, %v1039_v60  ;;  %1665 = vmatprep.mubr.msk.f32.mxu1 %vm1858_vm1, %v1857_v22 }
 0x6cc   : > { %1673 = vmatprep.subr.bf16.mxu1 %v1857_v22 }
 0x6ce   : > { %1666 = vmatmul.mubr.msk.f32.vlgmr.msra.gmra.mrb[10].mxu1 %vm519_vm3, %v1037_v61  ;;  %v1589_v61 = vld [vmem:[%s2209_s7] ss:$0 sm:$0xff] }
 0x6cf   : > { %1681 = vmatprep.mubr.msk.bf16.mxu1 %vm1858_vm1, %v1857_v22  ;;  %1674 = vmatpush3.bf16.msra.mxu1 %v1760_v29 }
 0x6d0   : > { %1675 = vmatprep.subr.bf16.mxu1 %v1857_v22 }
 0x6d3   : > { %1676 = vmatpush3.bf16.msra.mxu1 %v1761_v30 }
 0x6d4   : > { %1677 = vmatprep.subr.bf16.mxu1 %v1857_v22 }
 0x6d7   : > { %1678 = vmatpush3.bf16.msra.mxu1 %v1762_v31 }
 0x6d8   : > { %1679 = vmatprep.subr.bf16.mxu1 %v1857_v22 }
 0x6db   : > { %1680 = vmatpush3.bf16.msra.mxu1 %v1763_v32 }
 0x799   : > { %v847_v62 = vpop.f32.mrb[6].mxu1 }
 0x79a   : > { %v1652_v63 = vpop.f32.mrb[7].mxu1 }
 0x79d   : > { %v934_v1 = vpop.f32.mrb[8].mxu1 }
 0x79e   : > { %v938_v2 = vmul.f32 0.25, %v934_v1  ;;  %v1657_v3 = vpop.f32.mrb[9].mxu1 }
 0x79f   : > { %v1767_v3 = vld [vmem:[%s2212_s10 + $0x8] sm:$0xff]  }
 0x7a0   : > { %v939_v4 = vsel %vm595_vm4, %v938_v2, -inf }
 0x7a1   : > { %940 = vmax.xlane.f32.xlu1 %v939_v4  ;;  %v1110_v5 = vpop.f32.mrb[10].mxu1  ;;  %v1768_v4 = vld [vmem:[%s2212_s10 + $0x10] sm:$0xff]  }
 0x7a2   : > { %v1114_v6 = vmul.f32 0.25, %v1110_v5  ;;  %v1667_v7 = vpop.f32.mrb[11].mxu1  ;;  %v1769_v5 = vld [vmem:[%s2212_s10 + $0x18] sm:$0xff]  }
 0x7a4   : > { %v1115_v8 = vsel %vm595_vm4, %v1114_v6, -inf }
 0x7a5   : > { %1116 = vmax.xlane.f32.xlu0 %v1115_v8 }
 0x7bb   : > { %1127 = vrot.lane.b32.xlu0 %v2026_v28, %s1865_s20 }
 0x82e   : > { %v941_v9 = vpop.xlane.xlu1 %940 }
 0x82f   : > { %v942_v10 = vsub.f32 %v938_v2, %v941_v9  ;;  %v1766_v2 = vld [vmem:[%s2212_s10] sm:$0xff]  }
 0x831   : > { %v943_v11 = vmul.f32 1.442695, %v942_v10 }
 0x832   : > { %v1117_v12 = vpop.xlane.xlu0 %1116 }
 0x833   : > { %1780 = vpow2.f32 %v943_v11  ;;  %v1118_v13 = vsub.f32 %v1114_v6, %v1117_v12  ;;  %v1590_v6 = vld [vmem:[%s2211_s9] ss:$0 sm:$0xff] }
 0x835   : > { %v1119_v14 = vmul.f32 1.442695, %v1118_v13 }
 0x836   : > { %v1128_v26 = vpop.permute.xlu0 %1127 }
 0x837   : > { %1782 = vpow2.f32 %v1119_v14 }
 0x83d   : > { %v1781_v15 = vpop.eup %1780 }
 0x83e   : > { %v945_v16 = vsel %vm595_vm4, %v1781_v15, 0.0 }
 0x83f   : > { %946 = vadd.xlane.f32.xlu1 %v945_v16 }
 0x841   : > { %v1783_v17 = vpop.eup %1782 }
 0x842   : > { %v1121_v18 = vsel %vm595_vm4, %v1783_v17, 0.0 }
 0x843   : > { %1122 = vadd.xlane.f32.xlu1 %v1121_v18 }
 0x854   : > { %951 = vrot.lane.b32.xlu1 %v2026_v28, %s1863_s18  ;;  %s1796_s18 = sshll.u32 %s1866_s16, 4  ;;  %s1797_s18 = int_to_ptr.vmem [resolvable:$false] %s1796_s18 }
 0x855   : > { %s1798_s1 = scalar_lea.vmem %s1797_s18, 256 }
 0x858   : > { %852 = vrot.lane.b32.xlu1 %v847_v62, %s1864_s19  ;;  %s1601_s19 = sshll.u32 %s1953_s25, 7 }
 0x859   : > { %s2159_s0 = scalar_lea.hbm %s2214_s12, %s1601_s19 }
 0x8cc   : > { %v947_v19 = vpop.xlane.xlu1 %946 }
 0x8cd   : > { %1784 = vrcp.f32 %v947_v19 }
 0x8d0   : > { %v1123_v20 = vpop.xlane.xlu1 %1122 }
 0x8d1   : > { %1786 = vrcp.f32 %v1123_v20 }
 0x8d4   : > { %v952_v21 = vpop.permute.xlu1 %951 }
 0x8d5   : > { %1659 = vmatpush3.msra.mxu0 %v952_v21  ;;  %v1594_v21 = vld [vmem:[%s2213_s11] ss:$0 sm:$0xff] }
 0x8d6   : > { %1668 = vmatprep.subr.mxu0 %v1857_v22 }
 0x8d7   : > { %v1785_v23 = vpop.eup %1784 }
 0x8d8   : > { %v949_v24 = vmul.f32 %v1785_v23, %v1781_v15  ;;  %v853_v25 = vpop.permute.xlu1 %852 }
 0x8d9   : > { %856 = vst.msk [vmem:[#allocation3] sm:$0xff] %vm855_vm5, %v853_v25 }
 0x8da   : > { %1661 = vmatmul.mubr.msk.f32.vlgmr.msra.gmra.mrb[4].mxu0 %vm595_vm4, %v949_v24 }
 0x8db   : > { %v1787_v27 = vpop.eup %1786  ;;  %1669 = vmatpush3.msra.mxu0 %v1128_v26  ;;  %1670 = vmatprep.mubr.msk.f32.mxu0 %vm1858_vm1, %v1857_v22 }
 0x8dc   : > { %v1125_v28 = vmul.f32 %v1787_v27, %v1783_v17  ;;  %1685 = vmatprep.subr.bf16.mxu0 %v1857_v22 }
 0x8de   : > { %1671 = vmatmul.mubr.msk.f32.vlgmr.msra.gmra.mrb[6].mxu0 %vm595_vm4, %v1125_v28 }
 0x8df   : > { %1689 = vmatprep.mubr.msk.bf16.mxu0 %vm1858_vm1, %v1857_v22  ;;  %1686 = vmatpush3.bf16.msra.mxu0 %v1764_v54 }
 0x8e0   : > { %1687 = vmatprep.subr.bf16.mxu0 %v1857_v22 }
 0x9ad   : > { %v1023_v33 = vpop.f32.mrb[4].mxu0 }
 0x9ae   : > { %1028 = vrot.lane.b32.xlu1 %v1023_v33, %s1862_s17  ;;  %v1662_v34 = vpop.f32.mrb[5].mxu0  ;;  %s402_s17 = sand.u32 1, %s1846_s22  }
 0x9af   : > { %s1561_s15 = sshll.u32 %s402_s17, 3  ;;  %s1485_s25 = scalar_lea.sflag [#allocation5], %s402_s17 }
 0x9b0   : > { %s404_s20 = scalar_lea.vmem [#allocation4], %s1561_s15 }
 0x9b1   : > { %v1199_v35 = vpop.f32.mrb[6].mxu0 }
 0x9b2   : > { %1204 = vrot.lane.b32.xlu1 %v1199_v35, %s2222_s26  ;;  %v1672_v36 = vpop.f32.mrb[7].mxu0  ;;  %s1498_s26 = sshll.u32 %s404_s20, 4  ;;  %s2161_s26 = int_to_ptr.vmem [resolvable:$true] %s1498_s26 }
 0x9b3   : > { %s1792_s15 = scalar_lea.vmem %s2161_s26, 128  ;;  %p1799_p0 = scmp.lt.s32.totalorder %s2161_s26, %s1797_s18 }
 0x9b4   : > { %p1793_p11 = scmp.ne.s32.totalorder %s2161_s26, %s1792_s15  ;;  %p1800_p1 = scmp.lt.s32.totalorder %s1798_s1, %s1792_s15 }
 0x9b6   : > { %p1794_p12 = pnand %p1793_p11, %p1970_p5  ;;  %p1801_p2 = por %p1800_p1, %p1799_p0 }
 0x9b8   : > { %p1795_p13 = pneg %p1794_p12 }
 0x9ba   : > { %p1802_p3 = pnand %p1801_p2, %p1795_p13 }
 0xa20   : > { %v1029_v37 = vpop.permute.xlu1 %1028 }
 0xa21   : > { %1032 = vst.msk [vmem:[#allocation3] sm:$0xff] %vm1031_vm6, %v1029_v37 }
 0xa24   : > { %v1205_v38 = vpop.permute.xlu1 %1204 }
 0xa25   : > { %1208 = vst.msk [vmem:[#allocation3] sm:$0xff] %vm1207_vm7, %v1205_v38 }
 0xa2c   : > { %v1209_v39 = vld [vmem:[#allocation3] sm:$0xff] }
 0xa2d   : > { %v1210_v40 = vpack.c.bf16 %v1209_v39, %v1209_v39 }
 0xa2f   : > { %1682 = vmatmul.mubr.msk.bf16.vlgmr.msra.gmra.mrb[12].mxu1 %vm512_vm2, %v1210_v40 }
 0xb02   : > { %v1287_v42 = vpop.f32.mrb[12].mxu1 }
 0xb03   : > { %v1288_v43 = vadd.f32 %v1582_v41, %v1287_v42  ;;  %v1683_v44 = vpop.f32.mrb[13].mxu1 }
 0xb04   : > { %v1290_v45 = vpop.f32.mrb[14].mxu1 }
 0xb05   : > { %v2108_v46 = vadd.f32 %v1288_v43, %v1985_v0  ;;  %v1684_v47 = vpop.f32.mrb[15].mxu1  ;;  %v1765_v0 = vld [vmem:[%s2210_s8 + $0x8] sm:$0xff]  }
 0xb06   : > { %1688 = vmatpush3.bf16.msra.mxu0 %v1765_v0 }
 0xb07   : > { %v1296_v48 = vsel %vm413_vm0, %v2108_v46, 0.0  ;;  %1693 = vmatprep.subr.bf16.mxu0 %v1857_v22 }
 0xb08   : > { %1297 = vadd.xlane.f32.xlu0 %v1296_v48 }
 0xb95   : > { %v1298_v49 = vpop.xlane.xlu0 %1297 }
 0xb96   : > { %v1299_v50 = vmul.f32 0.03125, %v1298_v49 }
 0xb98   : > { %v1300_v51 = vsub.f32 %v2108_v46, %v1299_v50 }
 0xb9a   : > { %v1301_v52 = vmul.f32 %v1300_v51, %v1300_v51 }
 0xb9c   : > { %v1302_v53 = vsel %vm413_vm0, %v1301_v52, 0.0 }
 0xb9d   : > { %1303 = vadd.xlane.f32.xlu1 %v1302_v53 }
 0xc2a   : > { %v1304_v55 = vpop.xlane.xlu1 %1303 }
 0xc2b   : > { %v1305_v56 = vmul.f32 0.03125, %v1304_v55 }
 0xc2d   : > { %v1306_v57 = vadd.f32 1e-05, %v1305_v56 }
 0xc2f   : > { %1788 = vrsqrt.f32 %v1306_v57 }
 0xc39   : > { %v1789_v58 = vpop.eup %1788 }
 0xc3a   : > { %v1308_v60 = vmul.f32 %v1789_v58, %v1300_v51 }
 0xc3c   : > { %v1315_v62 = vmul.f32 %v1588_v59, %v1308_v60 }
 0xc3e   : > { %v1322_v63 = vadd.f32 %v1589_v61, %v1315_v62 }
 0xc40   : > { %v1323_v1 = vpack.c.bf16 %v1322_v63, %v1322_v63 }
 0xc42   : > { %1690 = vmatmul.mubr.msk.bf16.vlgmr.msra.gmra.mrb[8].mxu0 %vm413_vm0, %v1323_v1 }
 0xc43   : > { %1701 = vmatprep.mubr.msk.bf16.mxu0 %vm1858_vm1, %v1857_v22  ;;  %1694 = vmatpush3.bf16.msra.mxu0 %v1766_v2 }
 0xc44   : > { %1695 = vmatprep.subr.bf16.mxu0 %v1857_v22 }
 0xc47   : > { %1696 = vmatpush3.bf16.msra.mxu0 %v1767_v3 }
 0xc48   : > { %1697 = vmatprep.subr.bf16.mxu0 %v1857_v22 }
 0xc4b   : > { %1698 = vmatpush3.bf16.msra.mxu0 %v1768_v4 }
 0xc4c   : > { %1699 = vmatprep.subr.bf16.mxu0 %v1857_v22 }
 0xc4f   : > { %1700 = vmatpush3.bf16.msra.mxu0 %v1769_v5 }
 0xd15   : > { %v1384_v7 = vpop.f32.mrb[8].mxu0 }
 0xd16   : > { %v1385_v8 = vadd.f32 %v1590_v6, %v1384_v7  ;;  %v1691_v9 = vpop.f32.mrb[9].mxu0 }
 0xd17   : > { %v1387_v10 = vpop.f32.mrb[10].mxu0 }
 0xd18   : > { %v1391_v11 = vmul.f32 0.044715, %v1385_v8  ;;  %v1692_v12 = vpop.f32.mrb[11].mxu0  ;;  %v1390_v22 = vmul.f32 0.5, %v1385_v8 }
 0xd1a   : > { %v1392_v13 = vmul.f32 %v1391_v11, %v1385_v8 }
 0xd1c   : > { %v1393_v14 = vmul.f32 %v1392_v13, %v1385_v8 }
 0xd1e   : > { %v1394_v15 = vadd.f32 %v1393_v14, %v1385_v8 }
 0xd20   : > { %v1395_v16 = vmul.f32 0.7978846, %v1394_v15 }
 0xd22   : > { %1790 = vtanh.f32 %v1395_v16 }
 0xd2c   : > { %v1791_v17 = vpop.eup %1790 }
 0xd2d   : > { %v1397_v18 = vadd.f32 1.0, %v1791_v17 }
 0xd2f   : > { %v1398_v19 = vmul.f32 %v1397_v18, %v1390_v22 }
 0xd31   : > { %v1399_v20 = vpack.c.bf16 %v1398_v19, %v1398_v19 }
 0xd33   : > { %1702 = vmatmul.mubr.msk.bf16.vlgmr.msra.gmra.mrb[12].mxu0 %vm512_vm2, %v1399_v20 }
 0xe06   : > { %v1476_v23 = vpop.f32.mrb[12].mxu0 }
 0xe07   : > { %v1477_v24 = vadd.f32 %v1594_v21, %v1476_v23  ;;  %v1703_v25 = vpop.f32.mrb[13].mxu0 }
 0xe08   : > { %v1479_v26 = vpop.f32.mrb[14].mxu0 }
 0xe09   : > { %v1482_v27 = vadd.f32 %v1477_v24, %v2108_v46  ;;  %v1704_v28 = vpop.f32.mrb[15].mxu0 }
 0xe0b   : > { %1483 = vst.msk [vmem:[%s404_s20] sm:$0xff] %vm413_vm0, %v1482_v27 }
 0xe0c   : > { %1805 = shalt.err (!%p1802_p3)
}
 0xe0d   : > { %s1806_s17 = scalar_lea.hbm %s2159_s0, 128  ;;  %s1810_s29 = scalar_lea.hbm %s2214_s12, 256 }
 0xe0e   : > { %p1807_p4 = scmp.ne.s32.totalorder %s2159_s0, %s1806_s17  ;;  %p1811_p9 = scmp.lt.u32.totalorder %s2159_s0, %s2214_s12 }
 0xe0f   : > { %p1812_p10 = scmp.lt.u32.totalorder %s1810_s29, %s1806_s17  ;;  %p1814_p12 = scmp.lt.u32.totalorder %s1806_s17, %s2159_s0 }
 0xe10   : > { %p1808_p7 = pnand %p1807_p4, %p1970_p5 }
 0xe11   : > { %p1813_p11 = por %p1812_p10, %p1811_p9 }
 0xe12   : > { %p1809_p8 = pneg %p1808_p7 }
 0xe13   : > { %p1815_p13 = por %p1814_p12, %p1813_p11 }
 0xe15   : > { %p1816_p0 = pnand %p1815_p13, %p1809_p8 }
 0xe17   : > { %1819 = shalt.err (!%p1816_p0)
}
 0xe18   : > { %1705 = dma.vmem_to_hbm [thread:$0]  (%p1970_p5), %s2161_s26, 128, %s2159_s0, %s1485_s25  }
 0xe19 PF: > { %p1711_p1 = scmp.ge.s32.totalorder %s1854_s24, 2  ;;  %s1510_s1 = sand.u32 1, %s1842_s21  }
 0xe1a   : > { %s1511_s15 = scalar_lea.sflag [#allocation5], %s1510_s1 }
 0xe1b   : > { %p1708_p2 = pnand %p1711_p1, %p1974_p6 }
 0xe1d   : > { %1837 = dma.done.wait (!%p1708_p2), %s1511_s15, 128  }
 0xe1e   : > { %1839 = vsyncadd (!%p1708_p2), %s1511_s15, 4294967168  ;;  %p22_p3 = scmp.ge.s32.totalorder %s1957_s27, 4   ;;  %s2223_s21 = smov %s1846_s22 }
 0xe1f   : > { %s2224_s22 = smov %s1850_s23  ;;  %s2225_s23 = smov %s1968_s30 }
 0xe20   : > { %s2226_s24 = smov %s1957_s27  ;;  %24 = sbr.rel (!%p22_p3) target bundleno = 6 (0x6), region = 103 }
 0xe27   :  { %1516 = vsyncpa [#allocation5], 1 }
 0xe28   :  { %1518 = vsyncpa [#allocation5 + $0x1], 1 }

// kernel: transformer_forward.2
= control target key start
LH: loop header
LB: loop body
LE: loop exit
PB: predicated region body
PF: predicated region fallthrough
CT: control target
= control target key end

     0   :  { %s1823_s21 = smov 0   ;;  %s2017_s0 = inlined_call_operand.vmem [shape: f32[2,8,32], index: 0, kind: input, shape index: {}]   ;;  %s2018_s1 = inlined_call_operand.vmem [shape: f32[1,32], index: 1, kind: input, shape index: {}]   ;;  %s2019_s2 = inlined_call_operand.vmem [shape: f32[1,32], index: 2, kind: input, shape index: {}]   ;;  %s2020_s3 = inlined_call_operand.vmem [shape: bf16[32,192], index: 3, kind: input, shape index: {}]   ;;  %s2021_s4 = inlined_call_operand.vmem [shape: bf16[64,32], index: 4, kind: input, shape index: {}]   ;;  %s2022_s5 = inlined_call_operand.vmem [shape: f32[1,32], index: 5, kind: input, shape index: {}]   ;;  %s2023_s6 = inlined_call_operand.vmem [shape: f32[1,32], index: 6, kind: input, shape index: {}]   ;;  %s2024_s7 = inlined_call_operand.vmem [shape: f32[1,32], index: 7, kind: input, shape index: {}]   ;;  %s2025_s8 = inlined_call_operand.vmem [shape: bf16[32,64], index: 8, kind: input, shape index: {}]   ;;  %s2026_s9 = inlined_call_operand.vmem [shape: f32[1,64], index: 9, kind: input, shape index: {}]   ;;  %s2027_s10 = inlined_call_operand.vmem [shape: bf16[64,32], index: 10, kind: input, shape index: {}]   ;;  %s2028_s11 = inlined_call_operand.vmem [shape: f32[1,32], index: 11, kind: input, shape index: {}]   ;;  %s2029_s12 = inlined_call_operand.vmem [shape: f32[2,8,32], index: 12, kind: output, shape index: {}]  }
   0x1 LB: > { %s1537_s22 = sadd.s32 4294967295, %s1746_s21   ;;  %p1541_p0 = scmp.ge.s32.totalorder %s1746_s21, 1  ;;  %s1746_s21 = sphi %s1823_s21, %s22_s21  }
   0x2   : > { %p361_p1 = scmp.lt.s32.totalorder %s1746_s21, 3 }
   0x4   : > { %p362_p2 = pnand %p1541_p0, %p361_p1 }
   0x5   : > { %p401_p3 = scmp.lt.s32.totalorder (!%p362_p2), %s1537_s22, 1  ;;  %vm413_vm0 = vcmask (!%p362_p2), 261120   ;;  %v1702_v7 = vld [vmem:[%s2020_s3 + $0x4] ss:$8 sps:$4 sm:$0xff] (!%p362_p2)   ;;  %v1704_v8 = vld [vmem:[%s2020_s3] ss:$8 sps:$4 sm:$0xff] (!%p362_p2)  }
   0x6   : > { %365 = sbr.rel (%p362_p2) target bundleno = 3584 (0xe00), region = 68  ;;  %v1705_v9 = vld [vmem:[%s2020_s3 + $0x14] ss:$8 sps:$4 sm:$0xff] (!%p362_p2)   ;;  %470 = vmatprep.subr.bf16.mxu0 (!%p362_p2), %v1702_v7  ;;  %v1748_v10 = vmov (!%p362_p2), 0   ;;  %v1707_v11 = vld [vmem:[%s2020_s3 + $0x10] ss:$8 sps:$4 sm:$0xff] (!%p362_p2)  }
   0x7   : > { %502 = vmatprep.mubr.bf16.mxu0 (!%p362_p2), %v1748_v10  ;;  %471 = vmatpush1.bf16.msra.mxu0 (!%p362_p2), %v1704_v8  ;;  %v1544_v16 = vld [vmem:[%s2018_s1] ss:$0 sm:$0xff] (!%p362_p2)  ;;  %v1749_v22 = vmov (!%p362_p2), 0.0   ;;  %vm1750_vm1 = vmmov (!%p362_p2), 0   ;;  %vm512_vm2 = vcmask (!%p362_p2), 523264   ;;  %s1751_s24 = smov (!%p362_p2), 48  }
   0x8   : > { %472 = vmatprep.subr.bf16.mxu0 (!%p362_p2), %v1705_v9  ;;  %v1545_v18 = vld [vmem:[%s2019_s2] ss:$0 sm:$0xff] (!%p362_p2)  ;;  %1612 = vmatprep.subr.mxu1 (!%p362_p2), %v1749_v22  ;;  %s1752_s25 = smov (!%p362_p2), 64   ;;  %vm519_vm3 = vcmask (!%p362_p2), 130048   ;;  %vm595_vm4 = vcmask (!%p362_p2), 64512   ;;  %s1754_s27 = smov (!%p362_p2), 32  }
   0x9   : > { %1614 = vmatprep.mubr.msk.f32.mxu1 (!%p362_p2), %vm1750_vm1, %v1749_v22  ;;  %s1755_s28 = smov (!%p362_p2), 96   ;;  %s1756_s29 = smov (!%p362_p2), 16   ;;  %vm855_vm5 = vcmask (!%p362_p2), 261248   ;;  %vm1031_vm6 = vcmask (!%p362_p2), 392448   ;;  %vm1207_vm7 = vcmask (!%p362_p2), 523648  }
   0xa   : > { %s1757_s30 = smov (!%p362_p2), 80  }
   0xb   : > { %473 = vmatpush1.bf16.msra.mxu0 (!%p362_p2), %v1707_v11 }
   0xc   : > { %1637 = vmatprep.subr.mxu0 (!%p362_p2), %v1749_v22 }
   0xd   : > { %s2031_s22 = smov (!%p401_p3, %s1537_s22), 1 }
   0xe   : > { %s1542_s23 = sshll.u32 %s2031_s22, 3 }
   0xf   : > { %s404_s26 = scalar_lea.vmem %s2017_s0, %s1542_s23  ;;  %s408_s15 = scalar_lea.vmem %s2029_s12, %s1542_s23 }
  0x10   : > { %v1839_v0 = vld [vmem:[%s404_s26] sm:$0xff]  ;;  %s1753_s26 = smov 112  }
  0x11   : > { %v414_v1 = vsel %vm413_vm0, %v1839_v0, 0.0 }
  0x12   : > { %415 = vadd.xlane.f32.xlu0 %v414_v1 }
  0x9f   : > { %v416_v2 = vpop.xlane.xlu0 %415 }
  0xa0   : > { %v418_v3 = vmul.f32 0.03125, %v416_v2 }
  0xa2   : > { %v419_v4 = vsub.f32 %v1839_v0, %v418_v3 }
  0xa4   : > { %v420_v5 = vmul.f32 %v419_v4, %v419_v4 }
  0xa6   : > { %v421_v6 = vsel %vm413_vm0, %v420_v5, 0.0 }
  0xa7   : > { %422 = vadd.xlane.f32.xlu0 %v421_v6 }
 0x134   : > { %v423_v12 = vpop.xlane.xlu0 %422 }
 0x135   : > { %v424_v13 = vmul.f32 0.03125, %v423_v12 }
 0x137   : > { %v425_v14 = vadd.f32 1e-05, %v424_v13 }
 0x139   : > { %1718 = vrsqrt.f32 %v425_v14 }
 0x143   : > { %v1719_v15 = vpop.eup %1718 }
 0x144   : > { %v427_v17 = vmul.f32 %v1719_v15, %v419_v4 }
 0x146   : > { %v434_v19 = vmul.f32 %v1544_v16, %v427_v17 }
 0x148   : > { %v441_v20 = vadd.f32 %v1545_v18, %v434_v19 }
 0x14a   : > { %v442_v21 = vpack.c.bf16 %v441_v20, %v441_v20 }
 0x14c   : > { %1550 = vmatmul.mubr.msk.bf16.vlgmr.msra.gmra.mrb[0].mxu0 %vm413_vm0, %v442_v21 }
 0x14d   : > { %1639 = vmatprep.mubr.msk.f32.mxu0 %vm1750_vm1, %v1749_v22 }
 0x21f   : > { %v1870_v23 = vpop.f32.mrb[0].mxu0 }
 0x220   : > { %v506_v24 = vpop.f32.mrb[1].mxu0  ;;  %686 = vrot.lane.b32.xlu0 %v1870_v23, %s1751_s24  ;;  %517 = vrot.lane.b32.xlu1 %v1870_v23, %s1752_s25 }
 0x221   : > { %513 = vst.msk [vmem:[#allocation2 + $0x8] sm:$0xff] %vm512_vm2, %v506_v24  ;;  %v508_v25 = vpop.f32.mrb[2].mxu0 }
 0x222   : > { %v509_v26 = vpop.f32.mrb[3].mxu0 }
 0x228   : > { %v1880_v28 = vld [vmem:[#allocation2 + $0x8] sm:$0xff] }
 0x292   : > { %v518_v27 = vpop.permute.xlu1 %517  ;;  %v687_v38 = vpop.permute.xlu0 %686 }
 0x293   : > { %1613 = vmatpush3.xpose.msk.msra.mxu1 %vm519_vm3, %v518_v27 }
 0x294   : > { %1617 = vmatprep.subr.mxu1 %v1749_v22 }
 0x296   : > { %1615 = vmatmul.mubr.msk.f32.vlgmr.msra.gmra.mrb[0].mxu1 %vm519_vm3, %v1870_v23 }
 0x297   : > { %1618 = vmatpush3.msra.mxu1 %v1880_v28  ;;  %1619 = vmatprep.mubr.msk.f32.mxu1 %vm1750_vm1, %v1749_v22 }
 0x298   : > { %1622 = vmatprep.subr.mxu1 %v1749_v22 }
 0x369   : > { %v590_v29 = vpop.f32.mrb[0].mxu1 }
 0x36a   : > { %v594_v30 = vmul.f32 0.25, %v590_v29  ;;  %v1616_v31 = vpop.f32.mrb[1].mxu1  ;;  %v1708_v29 = vld [vmem:[%s2021_s4] sm:$0xff]  }
 0x36b   : > { %v1710_v31 = vld [vmem:[%s2021_s4 + $0x10] sm:$0xff]  }
 0x36c   : > { %v596_v32 = vsel %vm595_vm4, %v594_v30, -inf }
 0x36d   : > { %597 = vmax.xlane.f32.xlu1 %v596_v32  ;;  %v1711_v32 = vld [vmem:[%s2021_s4 + $0x18] sm:$0xff]  }
 0x37e   : > { %775 = vrot.lane.b32.xlu1 %v1880_v28, %s1753_s26 }
 0x382   : > { %862 = vrot.lane.b32.xlu1 %v1870_v23, %s1754_s27 }
 0x386   : > { %860 = vrot.lane.b32.xlu1 %v1870_v23, %s1755_s28 }
 0x3fa   : > { %v598_v33 = vpop.xlane.xlu1 %597 }
 0x3fb   : > { %v599_v34 = vsub.f32 %v594_v30, %v598_v33  ;;  %v1709_v30 = vld [vmem:[%s2021_s4 + $0x8] sm:$0xff]  }
 0x3fd   : > { %v600_v35 = vmul.f32 1.442695, %v599_v34 }
 0x3fe   : > { %v776_v43 = vpop.permute.xlu1 %775 }
 0x3ff   : > { %1720 = vpow2.f32 %v600_v35 }
 0x402   : > { %v863_v55 = vpop.permute.xlu1 %862 }
 0x406   : > { %v861_v56 = vpop.permute.xlu1 %860 }
 0x409   : > { %v1721_v36 = vpop.eup %1720 }
 0x40a   : > { %v602_v37 = vsel %vm595_vm4, %v1721_v36, 0.0 }
 0x40b   : > { %603 = vadd.xlane.f32.xlu0 %v602_v37 }
 0x421   : > { %684 = vrot.lane.b32.xlu0 %v1870_v23, %s1753_s26 }
 0x498   : > { %v604_v39 = vpop.xlane.xlu0 %603 }
 0x499   : > { %1722 = vrcp.f32 %v604_v39 }
 0x49c   : > { %v685_v42 = vpop.permute.xlu0 %684 }
 0x4a3   : > { %v1723_v40 = vpop.eup %1722 }
 0x4a4   : > { %v606_v41 = vmul.f32 %v1723_v40, %v1721_v36 }
 0x4a6   : > { %1620 = vmatmul.mubr.msk.f32.vlgmr.msra.gmra.mrb[2].mxu1 %vm595_vm4, %v606_v41  ;;  %v1563_v41 = vld [vmem:[%s2022_s5] ss:$0 sm:$0xff] }
 0x4a7   : > { %1623 = vmatpush3.xpose.msk.msra.mxu1 %vm519_vm3, %v687_v38  ;;  %1624 = vmatprep.mubr.msk.f32.mxu1 %vm1750_vm1, %v1749_v22 }
 0x4a8   : > { %1627 = vmatprep.subr.mxu1 %v1749_v22 }
 0x4aa   : > { %1625 = vmatmul.mubr.msk.f32.vlgmr.msra.gmra.mrb[4].mxu1 %vm519_vm3, %v685_v42 }
 0x4ab   : > { %1628 = vmatpush3.msra.mxu1 %v776_v43  ;;  %1629 = vmatprep.mubr.msk.f32.mxu1 %vm1750_vm1, %v1749_v22 }
 0x4ac   : > { %1632 = vmatprep.subr.mxu1 %v1749_v22 }
 0x579   : > { %v676_v44 = vpop.f32.mrb[2].mxu1 }
 0x57a   : > { %680 = vst.msk [vmem:[#allocation3] sm:$0xff] %vm519_vm3, %v676_v44  ;;  %v1621_v45 = vpop.f32.mrb[3].mxu1 }
 0x57d   : > { %v758_v46 = vpop.f32.mrb[4].mxu1 }
 0x57e   : > { %v762_v47 = vmul.f32 0.25, %v758_v46  ;;  %v1626_v48 = vpop.f32.mrb[5].mxu1 }
 0x580   : > { %v763_v49 = vsel %vm595_vm4, %v762_v47, -inf }
 0x581   : > { %764 = vmax.xlane.f32.xlu0 %v763_v49 }
 0x597   : > { %1038 = vrot.lane.b32.xlu0 %v1870_v23, %s1756_s29 }
 0x60e   : > { %v765_v50 = vpop.xlane.xlu0 %764 }
 0x60f   : > { %v766_v51 = vsub.f32 %v762_v47, %v765_v50 }
 0x611   : > { %v767_v52 = vmul.f32 1.442695, %v766_v51 }
 0x612   : > { %v1039_v60 = vpop.permute.xlu0 %1038 }
 0x613   : > { %1724 = vpow2.f32 %v767_v52 }
 0x61d   : > { %v1725_v53 = vpop.eup %1724 }
 0x61e   : > { %v769_v54 = vsel %vm595_vm4, %v1725_v53, 0.0 }
 0x61f   : > { %770 = vadd.xlane.f32.xlu1 %v769_v54  ;;  %v1712_v54 = vld [vmem:[%s2025_s8] sm:$0xff]  }
 0x630   : > { %1036 = vrot.lane.b32.xlu1 %v1870_v23, %s1757_s30 }
 0x6ac   : > { %v771_v57 = vpop.xlane.xlu1 %770 }
 0x6ad   : > { %1726 = vrcp.f32 %v771_v57 }
 0x6b0   : > { %v1037_v61 = vpop.permute.xlu1 %1036 }
 0x6b7   : > { %v1727_v58 = vpop.eup %1726 }
 0x6b8   : > { %v773_v59 = vmul.f32 %v1727_v58, %v1725_v53 }
 0x6ba   : > { %1630 = vmatmul.mubr.msk.f32.vlgmr.msra.gmra.mrb[6].mxu1 %vm595_vm4, %v773_v59  ;;  %v1569_v59 = vld [vmem:[%s2023_s6] ss:$0 sm:$0xff] }
 0x6bb   : > { %1633 = vmatpush3.xpose.msk.msra.mxu1 %vm519_vm3, %v863_v55  ;;  %1634 = vmatprep.mubr.msk.f32.mxu1 %vm1750_vm1, %v1749_v22 }
 0x6bc   : > { %1642 = vmatprep.subr.mxu1 %v1749_v22 }
 0x6be   : > { %1635 = vmatmul.mubr.msk.f32.vlgmr.msra.gmra.mrb[8].mxu1 %vm519_vm3, %v861_v56 }
 0x6bf   : > { %1643 = vmatpush3.xpose.msk.msra.mxu1 %vm519_vm3, %v1039_v60  ;;  %1644 = vmatprep.mubr.msk.f32.mxu1 %vm1750_vm1, %v1749_v22 }
 0x6c0   : > { %1652 = vmatprep.subr.bf16.mxu1 %v1749_v22 }
 0x6c2   : > { %1645 = vmatmul.mubr.msk.f32.vlgmr.msra.gmra.mrb[10].mxu1 %vm519_vm3, %v1037_v61  ;;  %v1570_v61 = vld [vmem:[%s2024_s7] ss:$0 sm:$0xff] }
 0x6c3   : > { %1660 = vmatprep.mubr.msk.bf16.mxu1 %vm1750_vm1, %v1749_v22  ;;  %1653 = vmatpush3.bf16.msra.mxu1 %v1708_v29 }
 0x6c4   : > { %1654 = vmatprep.subr.bf16.mxu1 %v1749_v22 }
 0x6c7   : > { %1655 = vmatpush3.bf16.msra.mxu1 %v1709_v30 }
 0x6c8   : > { %1656 = vmatprep.subr.bf16.mxu1 %v1749_v22 }
 0x6cb   : > { %1657 = vmatpush3.bf16.msra.mxu1 %v1710_v31 }
 0x6cc   : > { %1658 = vmatprep.subr.bf16.mxu1 %v1749_v22 }
 0x6cf   : > { %1659 = vmatpush3.bf16.msra.mxu1 %v1711_v32 }
 0x78d   : > { %v847_v62 = vpop.f32.mrb[6].mxu1 }
 0x78e   : > { %v1631_v63 = vpop.f32.mrb[7].mxu1 }
 0x791   : > { %v934_v1 = vpop.f32.mrb[8].mxu1 }
 0x792   : > { %v938_v2 = vmul.f32 0.25, %v934_v1  ;;  %v1636_v3 = vpop.f32.mrb[9].mxu1 }
 0x793   : > { %v1715_v3 = vld [vmem:[%s2027_s10 + $0x8] sm:$0xff]  }
 0x794   : > { %v939_v4 = vsel %vm595_vm4, %v938_v2, -inf }
 0x795   : > { %940 = vmax.xlane.f32.xlu1 %v939_v4  ;;  %v1110_v5 = vpop.f32.mrb[10].mxu1  ;;  %v1716_v4 = vld [vmem:[%s2027_s10 + $0x10] sm:$0xff]  }
 0x796   : > { %v1114_v6 = vmul.f32 0.25, %v1110_v5  ;;  %v1646_v7 = vpop.f32.mrb[11].mxu1  ;;  %v1717_v5 = vld [vmem:[%s2027_s10 + $0x18] sm:$0xff]  }
 0x798   : > { %v1115_v8 = vsel %vm595_vm4, %v1114_v6, -inf }
 0x799   : > { %1116 = vmax.xlane.f32.xlu0 %v1115_v8 }
 0x7af   : > { %1127 = vrot.lane.b32.xlu0 %v1880_v28, %s1757_s30 }
 0x822   : > { %v941_v9 = vpop.xlane.xlu1 %940 }
 0x823   : > { %v942_v10 = vsub.f32 %v938_v2, %v941_v9  ;;  %v1714_v2 = vld [vmem:[%s2027_s10] sm:$0xff]  }
 0x825   : > { %v943_v11 = vmul.f32 1.442695, %v942_v10 }
 0x826   : > { %v1117_v12 = vpop.xlane.xlu0 %1116 }
 0x827   : > { %1728 = vpow2.f32 %v943_v11  ;;  %v1118_v13 = vsub.f32 %v1114_v6, %v1117_v12  ;;  %v1571_v6 = vld [vmem:[%s2026_s9] ss:$0 sm:$0xff] }
 0x829   : > { %v1119_v14 = vmul.f32 1.442695, %v1118_v13 }
 0x82a   : > { %v1128_v26 = vpop.permute.xlu0 %1127 }
 0x82b   : > { %1730 = vpow2.f32 %v1119_v14 }
 0x831   : > { %v1729_v15 = vpop.eup %1728 }
 0x832   : > { %v945_v16 = vsel %vm595_vm4, %v1729_v15, 0.0 }
 0x833   : > { %946 = vadd.xlane.f32.xlu1 %v945_v16 }
 0x835   : > { %v1731_v17 = vpop.eup %1730 }
 0x836   : > { %v1121_v18 = vsel %vm595_vm4, %v1731_v17, 0.0 }
 0x837   : > { %1122 = vadd.xlane.f32.xlu1 %v1121_v18 }
 0x848   : > { %951 = vrot.lane.b32.xlu1 %v1880_v28, %s1755_s28 }
 0x84c   : > { %852 = vrot.lane.b32.xlu1 %v847_v62, %s1756_s29 }
 0x8c0   : > { %v947_v19 = vpop.xlane.xlu1 %946 }
 0x8c1   : > { %1732 = vrcp.f32 %v947_v19 }
 0x8c4   : > { %v1123_v20 = vpop.xlane.xlu1 %1122 }
 0x8c5   : > { %1734 = vrcp.f32 %v1123_v20 }
 0x8c8   : > { %v952_v21 = vpop.permute.xlu1 %951 }
 0x8c9   : > { %1638 = vmatpush3.msra.mxu0 %v952_v21  ;;  %v1575_v21 = vld [vmem:[%s2028_s11] ss:$0 sm:$0xff] }
 0x8ca   : > { %1647 = vmatprep.subr.mxu0 %v1749_v22 }
 0x8cb   : > { %v1733_v23 = vpop.eup %1732 }
 0x8cc   : > { %v949_v24 = vmul.f32 %v1733_v23, %v1729_v15  ;;  %v853_v25 = vpop.permute.xlu1 %852 }
 0x8cd   : > { %856 = vst.msk [vmem:[#allocation3] sm:$0xff] %vm855_vm5, %v853_v25 }
 0x8ce   : > { %1640 = vmatmul.mubr.msk.f32.vlgmr.msra.gmra.mrb[4].mxu0 %vm595_vm4, %v949_v24 }
 0x8cf   : > { %v1735_v27 = vpop.eup %1734  ;;  %1648 = vmatpush3.msra.mxu0 %v1128_v26  ;;  %1649 = vmatprep.mubr.msk.f32.mxu0 %vm1750_vm1, %v1749_v22 }
 0x8d0   : > { %v1125_v28 = vmul.f32 %v1735_v27, %v1731_v17  ;;  %1664 = vmatprep.subr.bf16.mxu0 %v1749_v22 }
 0x8d2   : > { %1650 = vmatmul.mubr.msk.f32.vlgmr.msra.gmra.mrb[6].mxu0 %vm595_vm4, %v1125_v28 }
 0x8d3   : > { %1668 = vmatprep.mubr.msk.bf16.mxu0 %vm1750_vm1, %v1749_v22  ;;  %1665 = vmatpush3.bf16.msra.mxu0 %v1712_v54 }
 0x8d4   : > { %1666 = vmatprep.subr.bf16.mxu0 %v1749_v22 }
 0x9a1   : > { %v1023_v33 = vpop.f32.mrb[4].mxu0 }
 0x9a2   : > { %1028 = vrot.lane.b32.xlu1 %v1023_v33, %s1754_s27  ;;  %v1641_v34 = vpop.f32.mrb[5].mxu0 }
 0x9a5   : > { %v1199_v35 = vpop.f32.mrb[6].mxu0 }
 0x9a6   : > { %1204 = vrot.lane.b32.xlu1 %v1199_v35, %s1751_s24  ;;  %v1651_v36 = vpop.f32.mrb[7].mxu0 }
 0xa14   : > { %v1029_v37 = vpop.permute.xlu1 %1028 }
 0xa15   : > { %1032 = vst.msk [vmem:[#allocation3] sm:$0xff] %vm1031_vm6, %v1029_v37 }
 0xa18   : > { %v1205_v38 = vpop.permute.xlu1 %1204 }
 0xa19   : > { %1208 = vst.msk [vmem:[#allocation3] sm:$0xff] %vm1207_vm7, %v1205_v38 }
 0xa20   : > { %v1209_v39 = vld [vmem:[#allocation3] sm:$0xff] }
 0xa21   : > { %v1210_v40 = vpack.c.bf16 %v1209_v39, %v1209_v39 }
 0xa23   : > { %1661 = vmatmul.mubr.msk.bf16.vlgmr.msra.gmra.mrb[12].mxu1 %vm512_vm2, %v1210_v40 }
 0xaf6   : > { %v1287_v42 = vpop.f32.mrb[12].mxu1 }
 0xaf7   : > { %v1288_v43 = vadd.f32 %v1563_v41, %v1287_v42  ;;  %v1662_v44 = vpop.f32.mrb[13].mxu1 }
 0xaf8   : > { %v1290_v45 = vpop.f32.mrb[14].mxu1 }
 0xaf9   : > { %v1962_v46 = vadd.f32 %v1288_v43, %v1839_v0  ;;  %v1663_v47 = vpop.f32.mrb[15].mxu1  ;;  %v1713_v0 = vld [vmem:[%s2025_s8 + $0x8] sm:$0xff]  }
 0xafa   : > { %1667 = vmatpush3.bf16.msra.mxu0 %v1713_v0 }
 0xafb   : > { %v1296_v48 = vsel %vm413_vm0, %v1962_v46, 0.0  ;;  %1672 = vmatprep.subr.bf16.mxu0 %v1749_v22 }
 0xafc   : > { %1297 = vadd.xlane.f32.xlu0 %v1296_v48 }
 0xb89   : > { %v1298_v49 = vpop.xlane.xlu0 %1297 }
 0xb8a   : > { %v1299_v50 = vmul.f32 0.03125, %v1298_v49 }
 0xb8c   : > { %v1300_v51 = vsub.f32 %v1962_v46, %v1299_v50 }
 0xb8e   : > { %v1301_v52 = vmul.f32 %v1300_v51, %v1300_v51 }
 0xb90   : > { %v1302_v53 = vsel %vm413_vm0, %v1301_v52, 0.0 }
 0xb91   : > { %1303 = vadd.xlane.f32.xlu1 %v1302_v53 }
 0xc1e   : > { %v1304_v55 = vpop.xlane.xlu1 %1303 }
 0xc1f   : > { %v1305_v56 = vmul.f32 0.03125, %v1304_v55 }
 0xc21   : > { %v1306_v57 = vadd.f32 1e-05, %v1305_v56 }
 0xc23   : > { %1736 = vrsqrt.f32 %v1306_v57 }
 0xc2d   : > { %v1737_v58 = vpop.eup %1736 }
 0xc2e   : > { %v1308_v60 = vmul.f32 %v1737_v58, %v1300_v51 }
 0xc30   : > { %v1315_v62 = vmul.f32 %v1569_v59, %v1308_v60 }
 0xc32   : > { %v1322_v63 = vadd.f32 %v1570_v61, %v1315_v62 }
 0xc34   : > { %v1323_v1 = vpack.c.bf16 %v1322_v63, %v1322_v63 }
 0xc36   : > { %1669 = vmatmul.mubr.msk.bf16.vlgmr.msra.gmra.mrb[8].mxu0 %vm413_vm0, %v1323_v1 }
 0xc37   : > { %1680 = vmatprep.mubr.msk.bf16.mxu0 %vm1750_vm1, %v1749_v22  ;;  %1673 = vmatpush3.bf16.msra.mxu0 %v1714_v2 }
 0xc38   : > { %1674 = vmatprep.subr.bf16.mxu0 %v1749_v22 }
 0xc3b   : > { %1675 = vmatpush3.bf16.msra.mxu0 %v1715_v3 }
 0xc3c   : > { %1676 = vmatprep.subr.bf16.mxu0 %v1749_v22 }
 0xc3f   : > { %1677 = vmatpush3.bf16.msra.mxu0 %v1716_v4 }
 0xc40   : > { %1678 = vmatprep.subr.bf16.mxu0 %v1749_v22 }
 0xc43   : > { %1679 = vmatpush3.bf16.msra.mxu0 %v1717_v5 }
 0xd09   : > { %v1384_v7 = vpop.f32.mrb[8].mxu0 }
 0xd0a   : > { %v1385_v8 = vadd.f32 %v1571_v6, %v1384_v7  ;;  %v1670_v9 = vpop.f32.mrb[9].mxu0 }
 0xd0b   : > { %v1387_v10 = vpop.f32.mrb[10].mxu0 }
 0xd0c   : > { %v1391_v11 = vmul.f32 0.044715, %v1385_v8  ;;  %v1671_v12 = vpop.f32.mrb[11].mxu0  ;;  %v1390_v18 = vmul.f32 0.5, %v1385_v8 }
 0xd0e   : > { %v1392_v13 = vmul.f32 %v1391_v11, %v1385_v8 }
 0xd10   : > { %v1393_v14 = vmul.f32 %v1392_v13, %v1385_v8 }
 0xd12   : > { %v1394_v15 = vadd.f32 %v1393_v14, %v1385_v8 }
 0xd14   : > { %v1395_v16 = vmul.f32 0.7978846, %v1394_v15 }
 0xd16   : > { %1738 = vtanh.f32 %v1395_v16 }
 0xd20   : > { %v1739_v17 = vpop.eup %1738 }
 0xd21   : > { %v1397_v22 = vadd.f32 1.0, %v1739_v17 }
 0xd23   : > { %v1398_v19 = vmul.f32 %v1397_v22, %v1390_v18 }
 0xd25   : > { %v1399_v20 = vpack.c.bf16 %v1398_v19, %v1398_v19 }
 0xd27   : > { %1681 = vmatmul.mubr.msk.bf16.vlgmr.msra.gmra.mrb[12].mxu0 %vm512_vm2, %v1399_v20 }
 0xdfa   : > { %v1476_v23 = vpop.f32.mrb[12].mxu0 }
 0xdfb   : > { %v1477_v24 = vadd.f32 %v1575_v21, %v1476_v23  ;;  %v1682_v25 = vpop.f32.mrb[13].mxu0 }
 0xdfc   : > { %v1479_v26 = vpop.f32.mrb[14].mxu0 }
 0xdfd   : > { %v1482_v27 = vadd.f32 %v1477_v24, %v1962_v46  ;;  %v1683_v28 = vpop.f32.mrb[15].mxu0 }
 0xdff   : > { %1483 = vst.msk [vmem:[%s408_s15] sm:$0xff] %vm413_vm0, %v1482_v27 }
 0xe00 PF: > { %s22_s21 = sadd.s32 1, %s1746_s21  }
 0xe01   : > { %p19_p4 = scmp.ge.s32.totalorder %s22_s21, 4  }
 0xe03   :  { %21 = sbr.rel (!%p19_p4) target bundleno = 1 (0x1), region = 98 }

</bundles_post_ra>
